<compile_context>
chip_gen: v7x
topology: tpu7x:2x2x1
jax: 0.10.0
libtpu: 0.0.40
codegen_flags: <defaults>
</compile_context>

<pallas_src>
import functools

import jax
import jax.numpy as jnp
from jax.experimental import pallas as pl
from jax.experimental.pallas import tpu as pltpu

LANE = 128  # pad every channel dimension up to one full lane width


def gcn_forward_kernel(seg_off_ref, seg_cnt_ref,       # SMEM: (G,) int32 each
                       a_ref, x_ref, w_ref, b_ref,     # VMEM inputs
                       out_ref,                        # VMEM output (G, LANE)
                       h_scr,                          # VMEM scratch (N, LANE)
                       *, num_classes, seg_size, num_graphs, num_layers):
    a = a_ref[...]            # (N, N) symmetric-normalized adjacency
    h = x_ref[...]            # (N, LANE) lane-padded node features
    n = a.shape[0]

    # GCNConv layers: H' = A_hat @ (H @ W_l) + b_l, ReLU on all but the last.
    for l in range(num_layers):
        xw = jnp.dot(h, w_ref[l], preferred_element_type=jnp.float32)     # MXU
        h = jnp.dot(a, xw, preferred_element_type=jnp.float32) + b_ref[l]  # MXU
        if l < num_layers - 1:
            h = jnp.maximum(h, 0.0)
        # TODO(synk): Dropout(p=0.1) after relu omitted (eval-mode identity).

    # Park final node embeddings so we can take dynamic row slices per graph.
    h_scr[...] = h

    # global_max_pool: segment max over contiguous per-graph node slices.
    # (No (G, N, C) broadcast — each graph touches only seg_size rows.)
    pooled_rows = []
    for g in range(num_graphs):
        off = seg_off_ref[g]
        cnt = seg_cnt_ref[g]
        off_c = jnp.minimum(off, n - seg_size)             # keep slice in bounds
        rows = h_scr[pl.ds(off_c, seg_size), :]            # (seg_size, LANE)
        ridx = off_c + jax.lax.broadcasted_iota(jnp.int32, (seg_size, 1), 0)
        valid = (ridx >= off) & (ridx < off + cnt)         # handles cnt < seg_size
        pooled_rows.append(
            jnp.max(jnp.where(valid, rows, -jnp.inf), axis=0, keepdims=True))
    pooled = jnp.concatenate(pooled_rows, axis=0)          # (G, LANE)

    # log_softmax over the valid class lanes only (padded lanes masked out).
    cls = jax.lax.broadcasted_iota(jnp.int32, (1, LANE), 1)
    masked = jnp.where(cls < num_classes, pooled, -jnp.inf)
    mx = jnp.max(masked, axis=1, keepdims=True)
    lse = jnp.log(jnp.sum(jnp.exp(masked - mx), axis=1, keepdims=True)) + mx
    out_ref[...] = pooled - lse                            # valid lanes == log_softmax


def _pad_axis(x, target, axis):
    pad = target - x.shape[axis]
    if pad <= 0:
        return x
    widths = [(0, 0)] * x.ndim
    widths[axis] = (0, pad)
    return jnp.pad(x, widths)


def firstnet_forward(a_hat, x, params, seg_off, seg_cnt, num_classes,
                     max_nodes_per_graph):
    """a_hat: (N,N) normalized adjacency; x: (N,F); seg_off/seg_cnt: (G,) int32
    contiguous per-graph node offsets/counts (precondition: every graph has >=1 node)."""
    N = a_hat.shape[0]
    G = seg_off.shape[0]
    num_layers = 4

    # Lane-pad x and stack lane-padded weights / biases (zero padding is exact:
    # padded input lanes multiply zero weight rows, padded output lanes get
    # zero weight cols + zero bias and stay zero through ReLU).
    x_pad = _pad_axis(x.astype(jnp.float32), LANE, axis=1)
    w_stack = jnp.zeros((num_layers, LANE, LANE), jnp.float32)
    b_stack = jnp.zeros((num_layers, 1, LANE), jnp.float32)
    for i in range(num_layers):
        w = params[f"w{i + 1}"]
        b = params[f"b{i + 1}"].reshape(1, -1)
        w_stack = w_stack.at[i, : w.shape[0], : w.shape[1]].set(w)
        b_stack = b_stack.at[i, :, : b.shape[1]].set(b)

    kernel = functools.partial(
        gcn_forward_kernel,
        num_classes=num_classes,
        seg_size=max_nodes_per_graph,
        num_graphs=G,
        num_layers=num_layers,
    )

    vmem = pl.BlockSpec(memory_space=pltpu.MemorySpace.VMEM)
    smem = pl.BlockSpec(memory_space=pltpu.MemorySpace.SMEM)

    out = pl.pallas_call(
        kernel,
        out_shape=jax.ShapeDtypeStruct((G, LANE), jnp.float32),
        in_specs=[smem, smem, vmem, vmem, vmem, vmem],
        out_specs=vmem,
        scratch_shapes=[pltpu.VMEM((N, LANE), jnp.float32)],
    )(seg_off.astype(jnp.int32), seg_cnt.astype(jnp.int32),
      a_hat.astype(jnp.float32), x_pad, w_stack, b_stack)

    return out[:, :num_classes]


def gcn_norm_adj(edge_index, num_nodes):
    """Dense D^-1/2 (A + I) D^-1/2, as in PyG GCNConv (add_self_loops=True)."""
    src, dst = edge_index
    a = jnp.zeros((num_nodes, num_nodes), jnp.float32)
    a = a.at[dst, src].set(1.0)
    a = a + jnp.eye(num_nodes, dtype=jnp.float32)
    deg = jnp.sum(a, axis=1)
    dinv = 1.0 / jnp.sqrt(deg)
    return a * dinv[:, None] * dinv[None, :]


def init_params(key, num_node_features, num_classes):
    dims = [num_node_features, 16, 32, 64, num_classes]
    keys = jax.random.split(key, 4)
    params = {}
    for i in range(4):
        fan_in, fan_out = dims[i], dims[i + 1]
        limit = jnp.sqrt(6.0 / (fan_in + fan_out))   # glorot-uniform, deterministic
        params[f"w{i + 1}"] = jax.random.uniform(
            keys[i], (fan_in, fan_out), jnp.float32, -limit, limit)
        params[f"b{i + 1}"] = jnp.zeros((1, fan_out), jnp.float32)
    return params


if __name__ == "__main__":
    key = jax.random.PRNGKey(0)
    k_x, k_w = jax.random.split(key)

    # 4 graphs x 32 nodes each -> N = 128 so the adjacency is lane-dense.
    G, PER = 4, 32
    N = G * PER
    F_IN, NUM_CLASSES = 8, 6

    x = jax.random.normal(k_x, (N, F_IN), jnp.float32)

    # undirected ring within each graph (edges never cross graphs)
    nodes = jnp.arange(N)
    nxt = jnp.where(nodes % PER == PER - 1, nodes - (PER - 1), nodes + 1)
    edge_index = jnp.stack([jnp.concatenate([nodes, nxt]),
                            jnp.concatenate([nxt, nodes])])       # (2, 2N)

    batch = jnp.repeat(jnp.arange(G), PER)                        # (N,) contiguous
    seg_off = jnp.arange(G, dtype=jnp.int32) * PER                # per-graph offsets
    seg_cnt = jnp.full((G,), PER, dtype=jnp.int32)                # per-graph counts

    a_hat = gcn_norm_adj(edge_index, N)
    params = init_params(k_w, F_IN, NUM_CLASSES)

    out = jax.block_until_ready(
        firstnet_forward(a_hat, x, params, seg_off, seg_cnt,
                         NUM_CLASSES, max_nodes_per_graph=PER))

    # pure-JAX reference (dropout in eval mode)
    h = x
    for i, relu in [(1, True), (2, True), (3, True), (4, False)]:
        h = a_hat @ (h @ params[f"w{i}"]) + params[f"b{i}"]
        if relu:
            h = jnp.maximum(h, 0.0)
    mask = batch[None, :] == jnp.arange(G)[:, None]
    pooled = jnp.max(jnp.where(mask[:, :, None], h[None], -jnp.inf), axis=1)
    ref = jax.nn.log_softmax(pooled, axis=1)

    assert out.shape == (G, NUM_CLASSES)
    assert jnp.allclose(out, ref, atol=5e-4), (out, ref)

    print("KERNEL_OK")
</pallas_src>

<mosaic_0001>
module attributes {stable_mosaic.version = 11 : i64} {
  func.func @gcn_forward_kernel(%arg0: memref<4xi32, #tpu.memory_space<smem>>, %arg1: memref<4xi32, #tpu.memory_space<smem>>, %arg2: memref<128x128xf32, #tpu.memory_space<vmem>>, %arg3: memref<128x128xf32, #tpu.memory_space<vmem>>, %arg4: memref<4x128x128xf32, #tpu.memory_space<vmem>>, %arg5: memref<4x1x128xf32, #tpu.memory_space<vmem>>, %arg6: memref<4x128xf32, #tpu.memory_space<vmem>>, %arg7: memref<128x128xf32, #tpu.memory_space<vmem>>) attributes {dimension_semantics = [], scalar_prefetch = 0 : i64, scratch_operands = 1 : i64, tpu.core_type = #tpu.core_type<tc>} {
    %c0 = arith.constant 0 : index
    %c0_0 = arith.constant 0 : index
    %0 = vector.load %arg2[%c0, %c0_0] : memref<128x128xf32, #tpu.memory_space<vmem>>, vector<128x128xf32>
    %c0_1 = arith.constant 0 : index
    %c0_2 = arith.constant 0 : index
    %1 = vector.load %arg3[%c0_1, %c0_2] : memref<128x128xf32, #tpu.memory_space<vmem>>, vector<128x128xf32>
    %c0_3 = arith.constant 0 : index
    %c0_4 = arith.constant 0 : index
    %c0_5 = arith.constant 0 : index
    %2 = vector.load %arg4[%c0_3, %c0_4, %c0_5] : memref<4x128x128xf32, #tpu.memory_space<vmem>>, vector<1x128x128xf32>
    %3 = vector.shape_cast %2 : vector<1x128x128xf32> to vector<128x128xf32>
    %cst = arith.constant dense<0.000000e+00> : vector<128x128xf32>
    %4 = tpu.matmul %1, %3, %cst {dimension_numbers = #tpu.dot_dimension_numbers<[1], [0], [0], [1], [0, 0, 1, 1], [], []>} : vector<128x128xf32>, vector<128x128xf32>, vector<128x128xf32> -> vector<128x128xf32>
    %cst_6 = arith.constant dense<0.000000e+00> : vector<128x128xf32>
    %5 = tpu.matmul %0, %4, %cst_6 {dimension_numbers = #tpu.dot_dimension_numbers<[1], [0], [0], [1], [0, 0, 1, 1], [], []>} : vector<128x128xf32>, vector<128x128xf32>, vector<128x128xf32> -> vector<128x128xf32>
    %c0_7 = arith.constant 0 : index
    %c0_8 = arith.constant 0 : index
    %c0_9 = arith.constant 0 : index
    %6 = vector.load %arg5[%c0_7, %c0_8, %c0_9] : memref<4x1x128xf32, #tpu.memory_space<vmem>>, vector<1x1x128xf32>
    %7 = vector.shape_cast %6 : vector<1x1x128xf32> to vector<1x128xf32>
    %8 = vector.broadcast %7 : vector<1x128xf32> to vector<128x128xf32>
    %9 = arith.addf %5, %8 : vector<128x128xf32>
    %cst_10 = arith.constant 0.000000e+00 : f32
    %10 = vector.broadcast %cst_10 : f32 to vector<128x128xf32>
    %11 = arith.maximumf %9, %10 : vector<128x128xf32>
    %c1 = arith.constant 1 : index
    %c0_11 = arith.constant 0 : index
    %c0_12 = arith.constant 0 : index
    %12 = vector.load %arg4[%c1, %c0_11, %c0_12] : memref<4x128x128xf32, #tpu.memory_space<vmem>>, vector<1x128x128xf32>
    %13 = vector.shape_cast %12 : vector<1x128x128xf32> to vector<128x128xf32>
    %cst_13 = arith.constant dense<0.000000e+00> : vector<128x128xf32>
    %14 = tpu.matmul %11, %13, %cst_13 {dimension_numbers = #tpu.dot_dimension_numbers<[1], [0], [0], [1], [0, 0, 1, 1], [], []>} : vector<128x128xf32>, vector<128x128xf32>, vector<128x128xf32> -> vector<128x128xf32>
    %cst_14 = arith.constant dense<0.000000e+00> : vector<128x128xf32>
    %15 = tpu.matmul %0, %14, %cst_14 {dimension_numbers = #tpu.dot_dimension_numbers<[1], [0], [0], [1], [0, 0, 1, 1], [], []>} : vector<128x128xf32>, vector<128x128xf32>, vector<128x128xf32> -> vector<128x128xf32>
    %c1_15 = arith.constant 1 : index
    %c0_16 = arith.constant 0 : index
    %c0_17 = arith.constant 0 : index
    %16 = vector.load %arg5[%c1_15, %c0_16, %c0_17] : memref<4x1x128xf32, #tpu.memory_space<vmem>>, vector<1x1x128xf32>
    %17 = vector.shape_cast %16 : vector<1x1x128xf32> to vector<1x128xf32>
    %18 = vector.broadcast %17 : vector<1x128xf32> to vector<128x128xf32>
    %19 = arith.addf %15, %18 : vector<128x128xf32>
    %cst_18 = arith.constant 0.000000e+00 : f32
    %20 = vector.broadcast %cst_18 : f32 to vector<128x128xf32>
    %21 = arith.maximumf %19, %20 : vector<128x128xf32>
    %c2 = arith.constant 2 : index
    %c0_19 = arith.constant 0 : index
    %c0_20 = arith.constant 0 : index
    %22 = vector.load %arg4[%c2, %c0_19, %c0_20] : memref<4x128x128xf32, #tpu.memory_space<vmem>>, vector<1x128x128xf32>
    %23 = vector.shape_cast %22 : vector<1x128x128xf32> to vector<128x128xf32>
    %cst_21 = arith.constant dense<0.000000e+00> : vector<128x128xf32>
    %24 = tpu.matmul %21, %23, %cst_21 {dimension_numbers = #tpu.dot_dimension_numbers<[1], [0], [0], [1], [0, 0, 1, 1], [], []>} : vector<128x128xf32>, vector<128x128xf32>, vector<128x128xf32> -> vector<128x128xf32>
    %cst_22 = arith.constant dense<0.000000e+00> : vector<128x128xf32>
    %25 = tpu.matmul %0, %24, %cst_22 {dimension_numbers = #tpu.dot_dimension_numbers<[1], [0], [0], [1], [0, 0, 1, 1], [], []>} : vector<128x128xf32>, vector<128x128xf32>, vector<128x128xf32> -> vector<128x128xf32>
    %c2_23 = arith.constant 2 : index
    %c0_24 = arith.constant 0 : index
    %c0_25 = arith.constant 0 : index
    %26 = vector.load %arg5[%c2_23, %c0_24, %c0_25] : memref<4x1x128xf32, #tpu.memory_space<vmem>>, vector<1x1x128xf32>
    %27 = vector.shape_cast %26 : vector<1x1x128xf32> to vector<1x128xf32>
    %28 = vector.broadcast %27 : vector<1x128xf32> to vector<128x128xf32>
    %29 = arith.addf %25, %28 : vector<128x128xf32>
    %cst_26 = arith.constant 0.000000e+00 : f32
    %30 = vector.broadcast %cst_26 : f32 to vector<128x128xf32>
    %31 = arith.maximumf %29, %30 : vector<128x128xf32>
    %c3 = arith.constant 3 : index
    %c0_27 = arith.constant 0 : index
    %c0_28 = arith.constant 0 : index
    %32 = vector.load %arg4[%c3, %c0_27, %c0_28] : memref<4x128x128xf32, #tpu.memory_space<vmem>>, vector<1x128x128xf32>
    %33 = vector.shape_cast %32 : vector<1x128x128xf32> to vector<128x128xf32>
    %cst_29 = arith.constant dense<0.000000e+00> : vector<128x128xf32>
    %34 = tpu.matmul %31, %33, %cst_29 {dimension_numbers = #tpu.dot_dimension_numbers<[1], [0], [0], [1], [0, 0, 1, 1], [], []>} : vector<128x128xf32>, vector<128x128xf32>, vector<128x128xf32> -> vector<128x128xf32>
    %cst_30 = arith.constant dense<0.000000e+00> : vector<128x128xf32>
    %35 = tpu.matmul %0, %34, %cst_30 {dimension_numbers = #tpu.dot_dimension_numbers<[1], [0], [0], [1], [0, 0, 1, 1], [], []>} : vector<128x128xf32>, vector<128x128xf32>, vector<128x128xf32> -> vector<128x128xf32>
    %c3_31 = arith.constant 3 : index
    %c0_32 = arith.constant 0 : index
    %c0_33 = arith.constant 0 : index
    %36 = vector.load %arg5[%c3_31, %c0_32, %c0_33] : memref<4x1x128xf32, #tpu.memory_space<vmem>>, vector<1x1x128xf32>
    %37 = vector.shape_cast %36 : vector<1x1x128xf32> to vector<1x128xf32>
    %38 = vector.broadcast %37 : vector<1x128xf32> to vector<128x128xf32>
    %39 = arith.addf %35, %38 : vector<128x128xf32>
    %c0_34 = arith.constant 0 : index
    %c0_35 = arith.constant 0 : index
    %40 = vector.load %arg7[%c0_34, %c0_35] : memref<128x128xf32, #tpu.memory_space<vmem>>, vector<128x128xf32>
    tpu.vector_store %arg7[%c0_34, %c0_35], %39 {strides = array<i32>} : memref<128x128xf32, #tpu.memory_space<vmem>>, vector<128x128xf32>,
    %c0_36 = arith.constant 0 : index
    %41 = memref.load %arg0[%c0_36] : memref<4xi32, #tpu.memory_space<smem>>
    %c0_37 = arith.constant 0 : index
    %42 = memref.load %arg1[%c0_37] : memref<4xi32, #tpu.memory_space<smem>>
    %c96_i32 = arith.constant 96 : i32
    %43 = arith.minsi %41, %c96_i32 : i32
    %44 = arith.index_cast %43 : i32 to index
    %c0_38 = arith.constant 0 : index
    %45 = vector.load %arg7[%44, %c0_38] : memref<128x128xf32, #tpu.memory_space<vmem>>, vector<32x128xf32>
    %46 = tpu.iota {dimensions = array<i32: 0>} : vector<32x1xi32>
    %47 = vector.broadcast %43 : i32 to vector<32x1xi32>
    %48 = arith.addi %47, %46 : vector<32x1xi32>
    %49 = vector.broadcast %41 : i32 to vector<32x1xi32>
    %50 = arith.cmpi sge, %48, %49 : vector<32x1xi32>
    %51 = arith.addi %41, %42 : i32
    %52 = vector.broadcast %51 : i32 to vector<32x1xi32>
    %53 = arith.cmpi slt, %48, %52 : vector<32x1xi32>
    %54 = arith.andi %50, %53 : vector<32x1xi1>
    %cst_39 = arith.constant 0xFF800000 : f32
    %55 = vector.shape_cast %54 : vector<32x1xi1> to vector<32x1xi1>
    %56 = vector.broadcast %55 : vector<32x1xi1> to vector<32x128xi1>
    %57 = vector.broadcast %cst_39 : f32 to vector<32x128xf32>
    %58 = arith.select %56, %45, %57 : vector<32x128xi1>, vector<32x128xf32>
    %cst_40 = arith.constant dense<0xFF800000> : vector<128xf32>
    %59 = vector.multi_reduction <maximumf>, %58, %cst_40 [0] : vector<32x128xf32> to vector<128xf32>
    %60 = vector.shape_cast %59 : vector<128xf32> to vector<1x128xf32>
    %c1_41 = arith.constant 1 : index
    %61 = memref.load %arg0[%c1_41] : memref<4xi32, #tpu.memory_space<smem>>
    %c1_42 = arith.constant 1 : index
    %62 = memref.load %arg1[%c1_42] : memref<4xi32, #tpu.memory_space<smem>>
    %c96_i32_43 = arith.constant 96 : i32
    %63 = arith.minsi %61, %c96_i32_43 : i32
    %64 = arith.index_cast %63 : i32 to index
    %c0_44 = arith.constant 0 : index
    %65 = vector.load %arg7[%64, %c0_44] : memref<128x128xf32, #tpu.memory_space<vmem>>, vector<32x128xf32>
    %66 = tpu.iota {dimensions = array<i32: 0>} : vector<32x1xi32>
    %67 = vector.broadcast %63 : i32 to vector<32x1xi32>
    %68 = arith.addi %67, %66 : vector<32x1xi32>
    %69 = vector.broadcast %61 : i32 to vector<32x1xi32>
    %70 = arith.cmpi sge, %68, %69 : vector<32x1xi32>
    %71 = arith.addi %61, %62 : i32
    %72 = vector.broadcast %71 : i32 to vector<32x1xi32>
    %73 = arith.cmpi slt, %68, %72 : vector<32x1xi32>
    %74 = arith.andi %70, %73 : vector<32x1xi1>
    %cst_45 = arith.constant 0xFF800000 : f32
    %75 = vector.shape_cast %74 : vector<32x1xi1> to vector<32x1xi1>
    %76 = vector.broadcast %75 : vector<32x1xi1> to vector<32x128xi1>
    %77 = vector.broadcast %cst_45 : f32 to vector<32x128xf32>
    %78 = arith.select %76, %65, %77 : vector<32x128xi1>, vector<32x128xf32>
    %cst_46 = arith.constant dense<0xFF800000> : vector<128xf32>
    %79 = vector.multi_reduction <maximumf>, %78, %cst_46 [0] : vector<32x128xf32> to vector<128xf32>
    %80 = vector.shape_cast %79 : vector<128xf32> to vector<1x128xf32>
    %c2_47 = arith.constant 2 : index
    %81 = memref.load %arg0[%c2_47] : memref<4xi32, #tpu.memory_space<smem>>
    %c2_48 = arith.constant 2 : index
    %82 = memref.load %arg1[%c2_48] : memref<4xi32, #tpu.memory_space<smem>>
    %c96_i32_49 = arith.constant 96 : i32
    %83 = arith.minsi %81, %c96_i32_49 : i32
    %84 = arith.index_cast %83 : i32 to index
    %c0_50 = arith.constant 0 : index
    %85 = vector.load %arg7[%84, %c0_50] : memref<128x128xf32, #tpu.memory_space<vmem>>, vector<32x128xf32>
    %86 = tpu.iota {dimensions = array<i32: 0>} : vector<32x1xi32>
    %87 = vector.broadcast %83 : i32 to vector<32x1xi32>
    %88 = arith.addi %87, %86 : vector<32x1xi32>
    %89 = vector.broadcast %81 : i32 to vector<32x1xi32>
    %90 = arith.cmpi sge, %88, %89 : vector<32x1xi32>
    %91 = arith.addi %81, %82 : i32
    %92 = vector.broadcast %91 : i32 to vector<32x1xi32>
    %93 = arith.cmpi slt, %88, %92 : vector<32x1xi32>
    %94 = arith.andi %90, %93 : vector<32x1xi1>
    %cst_51 = arith.constant 0xFF800000 : f32
    %95 = vector.shape_cast %94 : vector<32x1xi1> to vector<32x1xi1>
    %96 = vector.broadcast %95 : vector<32x1xi1> to vector<32x128xi1>
    %97 = vector.broadcast %cst_51 : f32 to vector<32x128xf32>
    %98 = arith.select %96, %85, %97 : vector<32x128xi1>, vector<32x128xf32>
    %cst_52 = arith.constant dense<0xFF800000> : vector<128xf32>
    %99 = vector.multi_reduction <maximumf>, %98, %cst_52 [0] : vector<32x128xf32> to vector<128xf32>
    %100 = vector.shape_cast %99 : vector<128xf32> to vector<1x128xf32>
    %c3_53 = arith.constant 3 : index
    %101 = memref.load %arg0[%c3_53] : memref<4xi32, #tpu.memory_space<smem>>
    %c3_54 = arith.constant 3 : index
    %102 = memref.load %arg1[%c3_54] : memref<4xi32, #tpu.memory_space<smem>>
    %c96_i32_55 = arith.constant 96 : i32
    %103 = arith.minsi %101, %c96_i32_55 : i32
    %104 = arith.index_cast %103 : i32 to index
    %c0_56 = arith.constant 0 : index
    %105 = vector.load %arg7[%104, %c0_56] : memref<128x128xf32, #tpu.memory_space<vmem>>, vector<32x128xf32>
    %106 = tpu.iota {dimensions = array<i32: 0>} : vector<32x1xi32>
    %107 = vector.broadcast %103 : i32 to vector<32x1xi32>
    %108 = arith.addi %107, %106 : vector<32x1xi32>
    %109 = vector.broadcast %101 : i32 to vector<32x1xi32>
    %110 = arith.cmpi sge, %108, %109 : vector<32x1xi32>
    %111 = arith.addi %101, %102 : i32
    %112 = vector.broadcast %111 : i32 to vector<32x1xi32>
    %113 = arith.cmpi slt, %108, %112 : vector<32x1xi32>
    %114 = arith.andi %110, %113 : vector<32x1xi1>
    %cst_57 = arith.constant 0xFF800000 : f32
    %115 = vector.shape_cast %114 : vector<32x1xi1> to vector<32x1xi1>
    %116 = vector.broadcast %115 : vector<32x1xi1> to vector<32x128xi1>
    %117 = vector.broadcast %cst_57 : f32 to vector<32x128xf32>
    %118 = arith.select %116, %105, %117 : vector<32x128xi1>, vector<32x128xf32>
    %cst_58 = arith.constant dense<0xFF800000> : vector<128xf32>
    %119 = vector.multi_reduction <maximumf>, %118, %cst_58 [0] : vector<32x128xf32> to vector<128xf32>
    %120 = vector.shape_cast %119 : vector<128xf32> to vector<1x128xf32>
    %121 = tpu.concatenate %60, %80, %100, %120 in 0 : vector<1x128xf32>, vector<1x128xf32>, vector<1x128xf32>, vector<1x128xf32> -> vector<4x128xf32>
    %122 = tpu.iota {dimensions = array<i32: 1>} : vector<1x128xi32>
    %c6_i32 = arith.constant 6 : i32
    %123 = vector.broadcast %c6_i32 : i32 to vector<1x128xi32>
    %124 = arith.cmpi slt, %122, %123 : vector<1x128xi32>
    %cst_59 = arith.constant 0xFF800000 : f32
    %125 = vector.shape_cast %124 : vector<1x128xi1> to vector<1x128xi1>
    %126 = vector.broadcast %125 : vector<1x128xi1> to vector<4x128xi1>
    %127 = vector.broadcast %cst_59 : f32 to vector<4x128xf32>
    %128 = arith.select %126, %121, %127 : vector<4x128xi1>, vector<4x128xf32>
    %cst_60 = arith.constant dense<0xFF800000> : vector<4xf32>
    %129 = vector.multi_reduction <maximumf>, %128, %cst_60 [1] : vector<4x128xf32> to vector<4xf32>
    %130 = vector.shape_cast %129 : vector<4xf32> to vector<4x1xf32>
    %131 = vector.broadcast %130 : vector<4x1xf32> to vector<4x128xf32>
    %132 = arith.subf %128, %131 : vector<4x128xf32>
    %133 = math.exp %132 : vector<4x128xf32>
    %cst_61 = arith.constant dense<0.000000e+00> : vector<4xf32>
    %134 = vector.multi_reduction <add>, %133, %cst_61 [1] : vector<4x128xf32> to vector<4xf32>
    %135 = vector.shape_cast %134 : vector<4xf32> to vector<4x1xf32>
    %136 = math.log %135 : vector<4x1xf32>
    %137 = arith.addf %136, %130 : vector<4x1xf32>
    %138 = vector.broadcast %137 : vector<4x1xf32> to vector<4x128xf32>
    %139 = arith.subf %121, %138 : vector<4x128xf32>
    %c0_62 = arith.constant 0 : index
    %c0_63 = arith.constant 0 : index
    %140 = vector.load %arg6[%c0_62, %c0_63] : memref<4x128xf32, #tpu.memory_space<vmem>>, vector<4x128xf32>
    tpu.vector_store %arg6[%c0_62, %c0_63], %139 {strides = array<i32>} : memref<4x128xf32, #tpu.memory_space<vmem>>, vector<4x128xf32>,
    return
  }
}

</mosaic_0001>

<bundles_post_ra>
// kernel: tpu_custom_call.1
= control target key start
LH: loop header
LB: loop body
LE: loop exit
PB: predicated region body
PF: predicated region fallthrough
CT: control target
= control target key end

     0   :  { %11 = vsyncpa [#allocation6], 0  ;;  %s3286_s0 = inlined_call_operand.hbm [shape: s32[4], index: 0, kind: input, shape index: {}]   ;;  %s3287_s1 = inlined_call_operand.vmem [shape: s32[4], index: 1, kind: input, shape index: {}]   ;;  %s3288_s2 = inlined_call_operand.hbm [shape: f32[128,128], index: 2, kind: input, shape index: {}]   ;;  %s3289_s3 = inlined_call_operand.hbm [shape: f32[128,128], index: 3, kind: input, shape index: {}]   ;;  %s3290_s4 = inlined_call_operand.hbm [shape: f32[4,128,128], index: 4, kind: input, shape index: {}]   ;;  %s3291_s5 = inlined_call_operand.vmem [shape: f32[4,1,128], index: 5, kind: input, shape index: {}]   ;;  %s3292_s6 = inlined_call_operand.hbm [shape: f32[4,128], index: 6, kind: output, shape index: {}]  }
   0x1   :  { %12 = vsyncpa [#allocation7], 0 }
   0x2   :  { %13 = vsyncpa [#allocation4], 0 }
   0x3   :  { %14 = vsyncpa [#allocation11], 0 }
   0x4   :  { %15 = vsyncpa [#allocation5], 0  ;;  %s2801_s21 = smov [#allocation10]   ;;  %s30_s25 = sshll.u32 %s3287_s1, 4  ;;  %s2847_s25 = int_to_ptr.vmem [resolvable:$true] %s30_s25 }
   0x5   :  { %s51_s22 = sshll.u32 %s2801_s21, 4  ;;  %s2681_s28 = scalar_lea.hbm %s3289_s3, 2048  ;;  %s52_s22 = int_to_ptr.vmem [resolvable:$true] %s51_s22 }
   0x6   :  { %p2682_p0 = scmp.ne.s32.totalorder %s3289_s3, %s2681_s28  ;;  %p2685_p1 = scmp.lt.u32.totalorder %s2681_s28, %s3289_s3 }
   0x8   :  { %p2687_p2 = pnand %p2685_p1, %p2682_p0 }
   0xa   :  { %2690 = shalt.err (!%p2687_p2)
}
   0xb   :  { %s2691_s9 = scalar_lea.vmem %s52_s22, 2048  ;;  %p2696_p4 = scmp.lt.s32.totalorder %s52_s22, %s52_s22 }
   0xc   :  { %p2692_p3 = scmp.ne.s32.totalorder %s52_s22, %s2691_s9  ;;  %p2697_p5 = scmp.lt.s32.totalorder %s2691_s9, %s2691_s9 }
   0xe   :  { %p2698_p6 = por %p2697_p5, %p2696_p4 }
  0x10   :  { %p2699_p7 = pnand %p2698_p6, %p2692_p3 }
  0x12   :  { %2702 = shalt.err (!%p2699_p7)
}
  0x13   :  { %s2802_s1 = smov 128   ;;  %s2803_s10 = smov 8  }
  0x14   :  { %57 = dma.hbm_to_vmem [thread:$0]  %s3289_s3, 2048, %s52_s22, [#allocation11], %s2802_s1, %s2802_s1, %s2803_s10  }
  0x15   :  { %s2703_s15 = scalar_lea.hbm %s3286_s0, 16 }
  0x16   :  { %p2704_p8 = scmp.ne.s32.totalorder %s3286_s0, %s2703_s15  ;;  %p2707_p9 = scmp.lt.u32.totalorder %s2703_s15, %s3286_s0 }
  0x18   :  { %p2709_p10 = pnand %p2707_p9, %p2704_p8 }
  0x1a   :  { %2712 = shalt.err (!%p2709_p10)
}
  0x1b   :  { %s2804_s20 = smov [#allocation3]   ;;  %s2713_s3 = scalar_lea.vmem %s2847_s25, 16 }
  0x1c   :  { %23 = dma.hbm_to_smem %s3286_s0, 16, %s2804_s20, [#allocation6]  }
  0x1d   :  { %p2714_p11 = scmp.ne.s32.totalorder %s2847_s25, %s2713_s3  ;;  %p2718_p12 = scmp.lt.s32.totalorder %s2847_s25, %s2847_s25 }
  0x1e   :  { %p2719_p13 = scmp.lt.s32.totalorder %s2713_s3, %s2713_s3 }
  0x20   :  { %p2720_p0 = por %p2719_p13, %p2718_p12 }
  0x22   :  { %p2721_p1 = pnand %p2720_p0, %p2714_p11 }
  0x24   :  { %2724 = shalt.err (!%p2721_p1)
}
  0x25   :  { %s2805_s22 = smov [#allocation8]   ;;  %s2806_s24 = smov [#allocation9]  }
  0x26   :  { %33 = dma.vmem_to_smem %s2847_s25, 16, %s2805_s22, [#allocation7]  }
  0x27   :  { %s39_s26 = sshll.u32 %s2806_s24, 4  ;;  %s2807_s27 = smov [#allocation12]   ;;  %s40_s26 = int_to_ptr.vmem [resolvable:$true] %s39_s26 }
  0x28   :  { %s63_s28 = sshll.u32 %s2807_s27, 4  ;;  %s2725_s0 = scalar_lea.hbm %s3288_s2, 2048  ;;  %s64_s28 = int_to_ptr.vmem [resolvable:$true] %s63_s28 }
  0x29   :  { %p2726_p2 = scmp.ne.s32.totalorder %s3288_s2, %s2725_s0  ;;  %p2729_p3 = scmp.lt.u32.totalorder %s2725_s0, %s3288_s2 }
  0x2b   :  { %p2731_p4 = pnand %p2729_p3, %p2726_p2 }
  0x2d   :  { %2734 = shalt.err (!%p2731_p4)
}
  0x2e   :  { %s2735_s25 = scalar_lea.vmem %s40_s26, 2048  ;;  %p2740_p6 = scmp.lt.s32.totalorder %s40_s26, %s40_s26 }
  0x2f   :  { %p2736_p5 = scmp.ne.s32.totalorder %s40_s26, %s2735_s25  ;;  %p2741_p7 = scmp.lt.s32.totalorder %s2735_s25, %s2735_s25 }
  0x31   :  { %p2742_p8 = por %p2741_p7, %p2740_p6 }
  0x33   :  { %p2743_p9 = pnand %p2742_p8, %p2736_p5 }
  0x35   :  { %2746 = shalt.err (!%p2743_p9)
}
  0x36   :  { %45 = dma.hbm_to_vmem [thread:$0]  %s3288_s2, 2048, %s40_s26, [#allocation4], %s2802_s1, %s2802_s1, %s2803_s10  }
  0x37   :  { %s2747_s16 = scalar_lea.hbm %s3290_s4, 8192 }
  0x38   :  { %p2748_p10 = scmp.ne.s32.totalorder %s3290_s4, %s2747_s16  ;;  %p2751_p11 = scmp.lt.u32.totalorder %s2747_s16, %s3290_s4 }
  0x3a   :  { %p2753_p12 = pnand %p2751_p11, %p2748_p10 }
  0x3c   :  { %2756 = shalt.err (!%p2753_p12)
}
  0x3d   :  { %s2757_s21 = scalar_lea.vmem %s64_s28, 8192  ;;  %p2762_p0 = scmp.lt.s32.totalorder %s64_s28, %s64_s28 }
  0x3e   :  { %p2758_p13 = scmp.ne.s32.totalorder %s64_s28, %s2757_s21  ;;  %p2763_p1 = scmp.lt.s32.totalorder %s2757_s21, %s2757_s21 }
  0x40   :  { %p2764_p2 = por %p2763_p1, %p2762_p0 }
  0x42   :  { %p2765_p3 = pnand %p2764_p2, %p2758_p13 }
  0x44   :  { %2768 = shalt.err (!%p2765_p3)
}
  0x45   :  { %69 = dma.hbm_to_vmem [thread:$0]  %s3290_s4, 8192, %s64_s28, [#allocation11], %s2802_s1, %s2802_s1, %s2803_s10  }
  0x46   :  { %2791 = dma.done.wait [#allocation6], 16  }
  0x47   :  { %2792 = vsyncadd [#allocation6], 4294967280 }
  0x48   :  { %2793 = dma.done.wait [#allocation7], 16  }
  0x49   :  { %2794 = vsyncadd [#allocation7], 4294967280 }
  0x4a   :  { %2795 = dma.done.wait [#allocation4], 2048  }
  0x4b   :  { %2796 = vsyncadd [#allocation4], 4294965248 }
  0x4c   :  { %2797 = dma.done.wait [#allocation11], 10240  }
  0x4d   :  { %2798 = vsyncadd [#allocation11], 4294957056 }
  0x4e   :  { %87 = sfence }
  0x4f   :  { %v120_v0 = vld [vmem:[#allocation12] sm:$0xff]  ;;  %v121_v1 = vld [vmem:[#allocation12 + $0x8] sm:$0xff]  ;;  %v122_v2 = vld [vmem:[#allocation12 + $0x10] sm:$0xff]  ;;  %s3016_s26 = sld [smem:[#allocation3]]  ;;  %s3023_s29 = sld [smem:[#allocation3 + $0x1]] }
  0x50   :  { %v2413_v3 = vpack.c.bf16 %v121_v1, %v120_v0  ;;  %v123_v4 = vld [vmem:[#allocation12 + $0x18] sm:$0xff]  ;;  %v124_v6 = vld [vmem:[#allocation12 + $0x20] sm:$0xff]  ;;  %v125_v7 = vld [vmem:[#allocation12 + $0x28] sm:$0xff]  ;;  %s3032_s30 = sld [smem:[#allocation3 + $0x3]]  ;;  %s3034_s0 = sld [smem:[#allocation8]] }
  0x51   :  { %v2417_v5 = vpack.c.bf16 %v123_v4, %v122_v2  ;;  %v2421_v8 = vpack.c.bf16 %v125_v7, %v124_v6  ;;  %v104_v9 = vld [vmem:[#allocation10] sm:$0xff]  ;;  %v126_v10 = vld [vmem:[#allocation12 + $0x30] sm:$0xff]  ;;  %v127_v11 = vld [vmem:[#allocation12 + $0x38] sm:$0xff]  ;;  %s3048_s8 = sld [smem:[#allocation8 + $0x1]]  ;;  %s3071_s11 = sld [smem:[#allocation8 + $0x2]] }
  0x52   :  { %2414 = vmatprep.subr.bf16.mxu0 %v2413_v3  ;;  %1997 = vmatprep.mubr.f32.mxu0 %v104_v9  ;;  %v2425_v12 = vpack.c.bf16 %v127_v11, %v126_v10  ;;  %v128_v13 = vld [vmem:[#allocation12 + $0x40] sm:$0xff]  ;;  %v129_v14 = vld [vmem:[#allocation12 + $0x48] sm:$0xff]  ;;  %v130_v16 = vld [vmem:[#allocation12 + $0x50] sm:$0xff]  ;;  %s3073_s25 = sld [smem:[#allocation8 + $0x3]]  ;;  %s2808_s2 = smov [#allocation13]  }
  0x53   :  { %2416 = vmatpush3.bf16.msra.mxu0 %v2413_v3  ;;  %v2429_v15 = vpack.c.bf16 %v129_v14, %v128_v13  ;;  %v131_v17 = vld [vmem:[#allocation12 + $0x58] sm:$0xff]  ;;  %v132_v19 = vld [vmem:[#allocation12 + $0x60] sm:$0xff]  ;;  %v133_v20 = vld [vmem:[#allocation12 + $0x68] sm:$0xff]  ;;  %s1680_s23 = sshll.u32 %s2808_s2, 4  ;;  %s1681_s23 = int_to_ptr.vmem [resolvable:$true] %s1680_s23 }
  0x54   :  { %2418 = vmatprep.subr.bf16.mxu0 %v2417_v5  ;;  %v2433_v18 = vpack.c.bf16 %v131_v17, %v130_v16  ;;  %v2437_v21 = vpack.c.bf16 %v133_v20, %v132_v19  ;;  %v134_v22 = vld [vmem:[#allocation12 + $0x70] sm:$0xff]  ;;  %v135_v23 = vld [vmem:[#allocation12 + $0x78] sm:$0xff]  ;;  %v105_v25 = vld [vmem:[#allocation10 + $0x8] sm:$0xff]  ;;  %s2769_s4 = scalar_lea.vmem %s1681_s23, 64  ;;  %p2774_p9 = scmp.lt.s32.totalorder %s1681_s23, %s1681_s23 }
  0x55   :  { %v2441_v24 = vpack.c.bf16 %v135_v23, %v134_v22  ;;  %v106_v26 = vld [vmem:[#allocation10 + $0x10] sm:$0xff]  ;;  %v107_v27 = vld [vmem:[#allocation10 + $0x18] sm:$0xff]  ;;  %v108_v28 = vld [vmem:[#allocation10 + $0x20] sm:$0xff]  ;;  %p1444_p4 = scmp.lt.s32.totalorder %s3016_s26, 96  ;;  %p1499_p5 = scmp.lt.s32.totalorder %s3023_s29, 96 }
  0x56   :  { %v109_v29 = vld [vmem:[#allocation10 + $0x28] sm:$0xff]  ;;  %v110_v30 = vld [vmem:[#allocation10 + $0x30] sm:$0xff]  ;;  %v111_v31 = vld [vmem:[#allocation10 + $0x38] sm:$0xff]  ;;  %s1466_s12 = sadd.s32 %s3034_s0, %s3016_s26  ;;  %p1599_p7 = scmp.lt.s32.totalorder %s3032_s30, 96 }
  0x57   :  { %2420 = vmatpush3.bf16.msra.mxu0 %v2417_v5  ;;  %v112_v32 = vld [vmem:[#allocation10 + $0x40] sm:$0xff]  ;;  %v113_v33 = vld [vmem:[#allocation10 + $0x48] sm:$0xff]  ;;  %v114_v34 = vld [vmem:[#allocation10 + $0x50] sm:$0xff]  ;;  %s3041_s7 = scalar_select %p1444_p4, %s3016_s26, 96 }
  0x58   :  { %2422 = vmatprep.subr.bf16.mxu0 %v2421_v8  ;;  %v115_v35 = vld [vmem:[#allocation10 + $0x58] sm:$0xff]  ;;  %v116_v36 = vld [vmem:[#allocation10 + $0x60] sm:$0xff]  ;;  %v117_v37 = vld [vmem:[#allocation10 + $0x68] sm:$0xff]  ;;  %s3057_s9 = scalar_select %p1499_p5, %s3023_s29, 96 }
  0x59   :  { %v118_v38 = vld [vmem:[#allocation10 + $0x70] sm:$0xff]  ;;  %v119_v39 = vld [vmem:[#allocation10 + $0x78] sm:$0xff]  ;;  %v2911_v40 = vld [vmem:[#allocation9] sm:$0xff]  ;;  %s1516_s14 = sadd.s32 %s3048_s8, %s3023_s29  ;;  %s1616_s17 = sadd.s32 %s3073_s25, %s3032_s30 }
  0x5a   :  { %2053 = vmatprep.mubr.f32.mxu1 %v2911_v40  ;;  %v450_v41 = vld [vmem:[#allocation12 + $0x80] sm:$0xff]  ;;  %v451_v42 = vld [vmem:[#allocation12 + $0x88] sm:$0xff]  ;;  %v452_v43 = vld [vmem:[#allocation12 + $0x90] sm:$0xff]  ;;  %s3115_s15 = scalar_select %p1599_p7, %s3032_s30, 96 }
  0x5b   :  { %2424 = vmatpush3.bf16.msra.mxu0 %v2421_v8  ;;  %v2477_v44 = vpack.c.bf16 %v451_v42, %v450_v41  ;;  %v453_v45 = vld [vmem:[#allocation12 + $0x98] sm:$0xff]  ;;  %v454_v47 = vld [vmem:[#allocation12 + $0xa0] sm:$0xff]  ;;  %v455_v48 = vld [vmem:[#allocation12 + $0xa8] sm:$0xff]  ;;  %s1446_s18 = scalar_lea.vmem [#allocation2], %s3041_s7  ;;  %s1501_s19 = scalar_lea.vmem [#allocation2], %s3057_s9 }
  0x5c   :  { %2426 = vmatprep.subr.bf16.mxu0 %v2425_v12  ;;  %v2481_v46 = vpack.c.bf16 %v453_v45, %v452_v43  ;;  %v2485_v49 = vpack.c.bf16 %v455_v48, %v454_v47  ;;  %v456_v50 = vld [vmem:[#allocation12 + $0xb0] sm:$0xff]  ;;  %v457_v51 = vld [vmem:[#allocation12 + $0xb8] sm:$0xff]  ;;  %v458_v53 = vld [vmem:[#allocation12 + $0xc0] sm:$0xff]  ;;  %s1601_s21 = scalar_lea.vmem [#allocation2], %s3115_s15  ;;  %p2770_p8 = scmp.ne.s32.totalorder %s1681_s23, %s2769_s4 }
  0x5d   :  { %v2489_v52 = vpack.c.bf16 %v457_v51, %v456_v50  ;;  %v459_v54 = vld [vmem:[#allocation12 + $0xc8] sm:$0xff]  ;;  %v460_v56 = vld [vmem:[#allocation12 + $0xd0] sm:$0xff]  ;;  %v461_v57 = vld [vmem:[#allocation12 + $0xd8] sm:$0xff]  ;;  %p2775_p10 = scmp.lt.s32.totalorder %s2769_s4, %s2769_s4 }
  0x5e   :  { %v2493_v55 = vpack.c.bf16 %v459_v54, %v458_v53  ;;  %v2497_v58 = vpack.c.bf16 %v461_v57, %v460_v56  ;;  %v462_v59 = vld [vmem:[#allocation12 + $0xe0] sm:$0xff]  ;;  %v463_v60 = vld [vmem:[#allocation12 + $0xe8] sm:$0xff]  ;;  %v2916_v23 = vld [vmem:[#allocation9 + $0x10] sm:$0xff] }
  0x5f   :  { %2428 = vmatpush3.bf16.msra.mxu0 %v2425_v12  ;;  %v2501_v61 = vpack.c.bf16 %v463_v60, %v462_v59  ;;  %v2914_v22 = vld [vmem:[#allocation9 + $0x8] sm:$0xff]  ;;  %v1696_v41 = vld [vmem:[%s3291_s5] ss:$0 sm:$0xff]  ;;  %p2776_p11 = por %p2775_p10, %p2774_p9 }
  0x60   :  { %2430 = vmatprep.subr.bf16.mxu0 %v2429_v15 }
  0x61   :  { %p2777_p12 = pnand %p2776_p11, %p2770_p8 }
  0x63   :  { %2432 = vmatpush3.bf16.msra.mxu0 %v2429_v15 }
  0x64   :  { %2434 = vmatprep.subr.bf16.mxu0 %v2433_v18 }
  0x67   :  { %2436 = vmatpush3.bf16.msra.mxu0 %v2433_v18 }
  0x68   :  { %2438 = vmatprep.subr.bf16.mxu0 %v2437_v21 }
  0x6b   :  { %2440 = vmatpush3.bf16.msra.mxu0 %v2437_v21 }
  0x6c   :  { %2442 = vmatprep.subr.bf16.mxu0 %v2441_v24 }
  0x6f   :  { %2444 = vmatpush3.bf16.msra.mxu0 %v2441_v24  ;;  %v2920_v24 = vld [vmem:[#allocation9 + $0x18] sm:$0xff] }
  0x70   :  { %2478 = vmatprep.subr.bf16.mxu0 %v2477_v44 }
  0x72   :  { %1998 = vmatmul.mubr.f32.vlgmr.msra.gmra.mrb[0].mxu0 %v105_v25  ;;  %v2922_v25 = vld [vmem:[#allocation9 + $0x20] sm:$0xff] }
  0x73   :  { %2000 = vmatprep.mubr.f32.mxu0 %v106_v26  ;;  %2480 = vmatpush3.bf16.msra.mxu0 %v2477_v44  ;;  %v2926_v26 = vld [vmem:[#allocation9 + $0x28] sm:$0xff] }
  0x74   :  { %2482 = vmatprep.subr.bf16.mxu0 %v2481_v46 }
  0x76   :  { %2001 = vmatmul.mubr.f32.gmra.mrb[2].mxu0 %v107_v27  ;;  %v2928_v27 = vld [vmem:[#allocation9 + $0x30] sm:$0xff] }
  0x77   :  { %2003 = vmatprep.mubr.f32.mxu0 %v108_v28  ;;  %2484 = vmatpush3.bf16.msra.mxu0 %v2481_v46  ;;  %v2932_v28 = vld [vmem:[#allocation9 + $0x38] sm:$0xff] }
  0x78   :  { %2486 = vmatprep.subr.bf16.mxu0 %v2485_v49 }
  0x7a   :  { %2004 = vmatmul.mubr.f32.gmra.mrb[4].mxu0 %v109_v29  ;;  %v2934_v29 = vld [vmem:[#allocation9 + $0x40] sm:$0xff] }
  0x7b   :  { %2006 = vmatprep.mubr.f32.mxu0 %v110_v30  ;;  %2488 = vmatpush3.bf16.msra.mxu0 %v2485_v49  ;;  %v2938_v30 = vld [vmem:[#allocation9 + $0x48] sm:$0xff] }
  0x7c   :  { %2490 = vmatprep.subr.bf16.mxu0 %v2489_v52 }
  0x7e   :  { %2007 = vmatmul.mubr.f32.gmra.mrb[6].mxu0 %v111_v31  ;;  %v2940_v31 = vld [vmem:[#allocation9 + $0x50] sm:$0xff] }
  0x7f   :  { %2009 = vmatprep.mubr.f32.mxu0 %v112_v32  ;;  %2492 = vmatpush3.bf16.msra.mxu0 %v2489_v52  ;;  %v2944_v32 = vld [vmem:[#allocation9 + $0x58] sm:$0xff] }
  0x80   :  { %2494 = vmatprep.subr.bf16.mxu0 %v2493_v55 }
  0x82   :  { %2010 = vmatmul.mubr.f32.gmra.mrb[8].mxu0 %v113_v33  ;;  %v2946_v33 = vld [vmem:[#allocation9 + $0x60] sm:$0xff] }
  0x83   :  { %2012 = vmatprep.mubr.f32.mxu0 %v114_v34  ;;  %2496 = vmatpush3.bf16.msra.mxu0 %v2493_v55  ;;  %v2950_v34 = vld [vmem:[#allocation9 + $0x68] sm:$0xff] }
  0x84   :  { %2498 = vmatprep.subr.bf16.mxu0 %v2497_v58 }
  0x86   :  { %2013 = vmatmul.mubr.f32.gmra.mrb[10].mxu0 %v115_v35  ;;  %v2952_v35 = vld [vmem:[#allocation9 + $0x70] sm:$0xff] }
  0x87   :  { %2015 = vmatprep.mubr.f32.mxu0 %v116_v36  ;;  %2500 = vmatpush3.bf16.msra.mxu0 %v2497_v58  ;;  %v2956_v36 = vld [vmem:[#allocation9 + $0x78] sm:$0xff] }
  0x88   :  { %2502 = vmatprep.subr.bf16.mxu0 %v2501_v61 }
  0x8a   :  { %2016 = vmatmul.mubr.f32.gmra.mrb[12].mxu0 %v117_v37  ;;  %v464_v37 = vld [vmem:[#allocation12 + $0xf0] sm:$0xff] }
  0x8b   :  { %2018 = vmatprep.mubr.f32.mxu0 %v118_v38  ;;  %2504 = vmatpush3.bf16.msra.mxu0 %v2501_v61  ;;  %v465_v38 = vld [vmem:[#allocation12 + $0xf8] sm:$0xff] }
  0x8e   :  { %2019 = vmatmul.mubr.f32.gmra.mrb[14].mxu0 %v119_v39  ;;  %v2505_v39 = vpack.c.bf16 %v465_v38, %v464_v37 }
  0x90   :  { %2506 = vmatprep.subr.bf16.mxu0 %v2505_v39 }
  0x91   :  { %2508 = vmatpush3.bf16.msra.mxu0 %v2505_v39 }
 0x145   :  { %v1999_v62 = vpop.f32.mrb[0].mxu0 }
 0x146   :  { %v202_v63 = vpop.f32.mrb[1].mxu0 }
 0x147   :  { %v2445_v0 = vpack.c.bf16 %v1999_v62, %v202_v63 }
 0x149   :  { %v2002_v1 = vpop.f32.mrb[2].mxu0  ;;  %2446 = vmatprep.subr.bf16.mxu1 %v2445_v0 }
 0x14a   :  { %v212_v2 = vpop.f32.mrb[3].mxu0  ;;  %2448 = vmatpush3.bf16.msra.mxu1 %v2445_v0 }
 0x14b   :  { %v2449_v3 = vpack.c.bf16 %v2002_v1, %v212_v2 }
 0x14d   :  { %v2005_v4 = vpop.f32.mrb[4].mxu0  ;;  %2450 = vmatprep.subr.bf16.mxu1 %v2449_v3 }
 0x14e   :  { %v222_v5 = vpop.f32.mrb[5].mxu0  ;;  %2452 = vmatpush3.bf16.msra.mxu1 %v2449_v3 }
 0x14f   :  { %v2453_v6 = vpack.c.bf16 %v2005_v4, %v222_v5 }
 0x151   :  { %v2008_v7 = vpop.f32.mrb[6].mxu0  ;;  %2454 = vmatprep.subr.bf16.mxu1 %v2453_v6 }
 0x152   :  { %v232_v8 = vpop.f32.mrb[7].mxu0  ;;  %2456 = vmatpush3.bf16.msra.mxu1 %v2453_v6 }
 0x153   :  { %v2457_v9 = vpack.c.bf16 %v2008_v7, %v232_v8 }
 0x155   :  { %v2011_v10 = vpop.f32.mrb[8].mxu0  ;;  %2458 = vmatprep.subr.bf16.mxu1 %v2457_v9 }
 0x156   :  { %v242_v11 = vpop.f32.mrb[9].mxu0  ;;  %2460 = vmatpush3.bf16.msra.mxu1 %v2457_v9 }
 0x157   :  { %v2461_v12 = vpack.c.bf16 %v2011_v10, %v242_v11 }
 0x159   :  { %v2014_v13 = vpop.f32.mrb[10].mxu0  ;;  %2462 = vmatprep.subr.bf16.mxu1 %v2461_v12 }
 0x15a   :  { %v252_v14 = vpop.f32.mrb[11].mxu0  ;;  %2464 = vmatpush3.bf16.msra.mxu1 %v2461_v12 }
 0x15b   :  { %v2465_v15 = vpack.c.bf16 %v2014_v13, %v252_v14 }
 0x15d   :  { %v2017_v16 = vpop.f32.mrb[12].mxu0  ;;  %2466 = vmatprep.subr.bf16.mxu1 %v2465_v15 }
 0x15e   :  { %v262_v17 = vpop.f32.mrb[13].mxu0  ;;  %2468 = vmatpush3.bf16.msra.mxu1 %v2465_v15 }
 0x15f   :  { %v2469_v18 = vpack.c.bf16 %v2017_v16, %v262_v17 }
 0x161   :  { %v2020_v19 = vpop.f32.mrb[14].mxu0  ;;  %2470 = vmatprep.subr.bf16.mxu1 %v2469_v18 }
 0x162   :  { %v272_v20 = vpop.f32.mrb[15].mxu0  ;;  %2472 = vmatpush3.bf16.msra.mxu1 %v2469_v18 }
 0x163   :  { %v2473_v21 = vpack.c.bf16 %v2020_v19, %v272_v20 }
 0x165   :  { %2474 = vmatprep.subr.bf16.mxu1 %v2473_v21 }
 0x166   :  { %2476 = vmatpush3.bf16.msra.mxu1 %v2473_v21 }
 0x169   :  { %2054 = vmatmul.mubr.f32.vlgmr.msra.gmra.mrb[0].mxu1 %v2914_v22 }
 0x16a   :  { %2056 = vmatprep.mubr.f32.mxu1 %v2916_v23 }
 0x16d   :  { %2057 = vmatmul.mubr.f32.gmra.mrb[2].mxu1 %v2920_v24 }
 0x16e   :  { %2059 = vmatprep.mubr.f32.mxu1 %v2922_v25 }
 0x171   :  { %2060 = vmatmul.mubr.f32.gmra.mrb[4].mxu1 %v2926_v26 }
 0x172   :  { %2062 = vmatprep.mubr.f32.mxu1 %v2928_v27 }
 0x175   :  { %2063 = vmatmul.mubr.f32.gmra.mrb[6].mxu1 %v2932_v28 }
 0x176   :  { %2065 = vmatprep.mubr.f32.mxu1 %v2934_v29 }
 0x179   :  { %2066 = vmatmul.mubr.f32.gmra.mrb[8].mxu1 %v2938_v30 }
 0x17a   :  { %2068 = vmatprep.mubr.f32.mxu1 %v2940_v31 }
 0x17d   :  { %2069 = vmatmul.mubr.f32.gmra.mrb[10].mxu1 %v2944_v32 }
 0x17e   :  { %2071 = vmatprep.mubr.f32.mxu1 %v2946_v33 }
 0x181   :  { %2072 = vmatmul.mubr.f32.gmra.mrb[12].mxu1 %v2950_v34 }
 0x182   :  { %2074 = vmatprep.mubr.f32.mxu1 %v2952_v35 }
 0x185   :  { %2075 = vmatmul.mubr.f32.gmra.mrb[14].mxu1 %v2956_v36 }
 0x186   :  { %2165 = vmatprep.mubr.f32.mxu1 %v2911_v40 }
 0x23c   :  { %v2055_v42 = vpop.f32.mrb[0].mxu1 }
 0x23d   :  { %v360_v43 = vadd.f32 %v2055_v42, %v1696_v41  ;;  %v354_v44 = vpop.f32.mrb[1].mxu1 }
 0x23e   :  { %v355_v45 = vadd.f32 %v1696_v41, %v354_v44  ;;  %v782_v44 = vld [vmem:[#allocation12 + $0x108] sm:$0xff] }
 0x23f   :  { %v434_v48 = vmax.f32 %v360_v43, 0.0  ;;  %v781_v43 = vld [vmem:[#allocation12 + $0x100] sm:$0xff] }
 0x240   :  { %v433_v46 = vmax.f32 %v355_v45, 0.0  ;;  %v2058_v47 = vpop.f32.mrb[2].mxu1  ;;  %v783_v45 = vld [vmem:[#allocation12 + $0x110] sm:$0xff] }
 0x241   :  { %v370_v49 = vadd.f32 %v2058_v47, %v1696_v41  ;;  %v364_v50 = vpop.f32.mrb[3].mxu1  ;;  %v784_v47 = vld [vmem:[#allocation12 + $0x118] sm:$0xff] }
 0x242   :  { %v365_v51 = vadd.f32 %v1696_v41, %v364_v50  ;;  %2109 = vmatprep.mubr.f32.mxu0 %v433_v46  ;;  %v2541_v46 = vpack.c.bf16 %v782_v44, %v781_v43  ;;  %v786_v50 = vld [vmem:[#allocation12 + $0x128] sm:$0xff]  ;;  %v1698_v43 = vld [vmem:[%s3291_s5 + $0x1] ss:$0 sm:$0xff] }
 0x243   :  { %2110 = vmatmul.mubr.f32.vlgmr.msra.gmra.mrb[16].mxu0 %v434_v48  ;;  %v436_v54 = vmax.f32 %v370_v49, 0.0  ;;  %v2545_v48 = vpack.c.bf16 %v784_v47, %v783_v45  ;;  %v785_v49 = vld [vmem:[#allocation12 + $0x120] sm:$0xff] }
 0x244   :  { %v435_v52 = vmax.f32 %v365_v51, 0.0  ;;  %v2061_v53 = vpop.f32.mrb[4].mxu1  ;;  %2542 = vmatprep.subr.bf16.mxu0 %v2541_v46  ;;  %v2549_v51 = vpack.c.bf16 %v786_v50, %v785_v49 }
 0x245   :  { %v380_v55 = vadd.f32 %v2061_v53, %v1696_v41  ;;  %v374_v56 = vpop.f32.mrb[5].mxu1  ;;  %2544 = vmatpush3.bf16.msra.mxu0 %v2541_v46 }
 0x246   :  { %v375_v57 = vadd.f32 %v1696_v41, %v374_v56  ;;  %2112 = vmatprep.mubr.f32.mxu0 %v435_v52  ;;  %2546 = vmatprep.subr.bf16.mxu0 %v2545_v48  ;;  %v787_v52 = vld [vmem:[#allocation12 + $0x130] sm:$0xff] }
 0x247   :  { %2113 = vmatmul.mubr.f32.gmra.mrb[18].mxu0 %v436_v54  ;;  %v438_v60 = vmax.f32 %v380_v55, 0.0  ;;  %v789_v54 = vld [vmem:[#allocation12 + $0x140] sm:$0xff]  ;;  %v790_v55 = vld [vmem:[#allocation12 + $0x148] sm:$0xff] }
 0x248   :  { %v437_v58 = vmax.f32 %v375_v57, 0.0  ;;  %v2064_v59 = vpop.f32.mrb[6].mxu1  ;;  %v2557_v56 = vpack.c.bf16 %v790_v55, %v789_v54  ;;  %v791_v57 = vld [vmem:[#allocation12 + $0x150] sm:$0xff] }
 0x249   :  { %v390_v61 = vadd.f32 %v2064_v59, %v1696_v41  ;;  %v384_v62 = vpop.f32.mrb[7].mxu1  ;;  %2548 = vmatpush3.bf16.msra.mxu0 %v2545_v48 }
 0x24a   :  { %v385_v63 = vadd.f32 %v1696_v41, %v384_v62  ;;  %2115 = vmatprep.mubr.f32.mxu0 %v437_v58  ;;  %2550 = vmatprep.subr.bf16.mxu0 %v2549_v51  ;;  %v792_v58 = vld [vmem:[#allocation12 + $0x158] sm:$0xff] }
 0x24b   :  { %2116 = vmatmul.mubr.f32.gmra.mrb[20].mxu0 %v438_v60  ;;  %v440_v2 = vmax.f32 %v390_v61, 0.0  ;;  %v2561_v59 = vpack.c.bf16 %v792_v58, %v791_v57  ;;  %v793_v60 = vld [vmem:[#allocation12 + $0x160] sm:$0xff]  ;;  %v794_v61 = vld [vmem:[#allocation12 + $0x168] sm:$0xff] }
 0x24c   :  { %v439_v0 = vmax.f32 %v385_v63, 0.0  ;;  %v2067_v1 = vpop.f32.mrb[8].mxu1  ;;  %v2565_v62 = vpack.c.bf16 %v794_v61, %v793_v60 }
 0x24d   :  { %v400_v3 = vadd.f32 %v2067_v1, %v1696_v41  ;;  %v394_v4 = vpop.f32.mrb[9].mxu1  ;;  %2552 = vmatpush3.bf16.msra.mxu0 %v2549_v51 }
 0x24e   :  { %v395_v5 = vadd.f32 %v1696_v41, %v394_v4  ;;  %2118 = vmatprep.mubr.f32.mxu0 %v439_v0 }
 0x24f   :  { %2119 = vmatmul.mubr.f32.gmra.mrb[22].mxu0 %v440_v2  ;;  %v442_v8 = vmax.f32 %v400_v3, 0.0 }
 0x250   :  { %v441_v6 = vmax.f32 %v395_v5, 0.0  ;;  %v2070_v7 = vpop.f32.mrb[10].mxu1 }
 0x251   :  { %v410_v9 = vadd.f32 %v2070_v7, %v1696_v41  ;;  %v404_v10 = vpop.f32.mrb[11].mxu1 }
 0x252   :  { %v405_v11 = vadd.f32 %v1696_v41, %v404_v10  ;;  %2121 = vmatprep.mubr.f32.mxu0 %v441_v6 }
 0x253   :  { %2122 = vmatmul.mubr.f32.gmra.mrb[24].mxu0 %v442_v8  ;;  %v444_v14 = vmax.f32 %v410_v9, 0.0 }
 0x254   :  { %v443_v12 = vmax.f32 %v405_v11, 0.0  ;;  %v2073_v13 = vpop.f32.mrb[12].mxu1 }
 0x255   :  { %v420_v15 = vadd.f32 %v2073_v13, %v1696_v41  ;;  %v414_v16 = vpop.f32.mrb[13].mxu1 }
 0x256   :  { %v415_v17 = vadd.f32 %v1696_v41, %v414_v16  ;;  %2124 = vmatprep.mubr.f32.mxu0 %v443_v12 }
 0x257   :  { %2125 = vmatmul.mubr.f32.gmra.mrb[26].mxu0 %v444_v14  ;;  %v446_v20 = vmax.f32 %v420_v15, 0.0 }
 0x258   :  { %v445_v18 = vmax.f32 %v415_v17, 0.0  ;;  %v2076_v19 = vpop.f32.mrb[14].mxu1 }
 0x259   :  { %v430_v21 = vadd.f32 %v2076_v19, %v1696_v41  ;;  %v424_v37 = vpop.f32.mrb[15].mxu1 }
 0x25a   :  { %v425_v38 = vadd.f32 %v1696_v41, %v424_v37  ;;  %2127 = vmatprep.mubr.f32.mxu0 %v445_v18  ;;  %v788_v41 = vld [vmem:[#allocation12 + $0x138] sm:$0xff] }
 0x25b   :  { %2128 = vmatmul.mubr.f32.gmra.mrb[28].mxu0 %v446_v20  ;;  %v448_v42 = vmax.f32 %v430_v21, 0.0  ;;  %v2553_v53 = vpack.c.bf16 %v788_v41, %v787_v52 }
 0x25c   :  { %v447_v39 = vmax.f32 %v425_v38, 0.0  ;;  %v795_v38 = vld [vmem:[#allocation12 + $0x170] sm:$0xff] }
 0x25d   :  { %2554 = vmatprep.subr.bf16.mxu0 %v2553_v53 }
 0x25e   :  { %2130 = vmatprep.mubr.f32.mxu0 %v447_v39  ;;  %2556 = vmatpush3.bf16.msra.mxu0 %v2553_v53  ;;  %v796_v39 = vld [vmem:[#allocation12 + $0x178] sm:$0xff] }
 0x25f   :  { %2131 = vmatmul.mubr.f32.gmra.mrb[30].mxu0 %v448_v42  ;;  %2558 = vmatprep.subr.bf16.mxu0 %v2557_v56  ;;  %v2569_v42 = vpack.c.bf16 %v796_v39, %v795_v38 }
 0x262   :  { %2560 = vmatpush3.bf16.msra.mxu0 %v2557_v56 }
 0x263   :  { %2562 = vmatprep.subr.bf16.mxu0 %v2561_v59 }
 0x266   :  { %2564 = vmatpush3.bf16.msra.mxu0 %v2561_v59 }
 0x267   :  { %2566 = vmatprep.subr.bf16.mxu0 %v2565_v62 }
 0x26a   :  { %2568 = vmatpush3.bf16.msra.mxu0 %v2565_v62 }
 0x26b   :  { %2570 = vmatprep.subr.bf16.mxu0 %v2569_v42 }
 0x26e   :  { %2572 = vmatpush3.bf16.msra.mxu0 %v2569_v42 }
 0x316   :  { %v2111_v63 = vpop.f32.mrb[16].mxu0 }
 0x317   :  { %v532_v0 = vpop.f32.mrb[17].mxu0 }
 0x318   :  { %v2509_v1 = vpack.c.bf16 %v2111_v63, %v532_v0 }
 0x31a   :  { %v2114_v2 = vpop.f32.mrb[18].mxu0  ;;  %2510 = vmatprep.subr.bf16.mxu1 %v2509_v1 }
 0x31b   :  { %v542_v3 = vpop.f32.mrb[19].mxu0  ;;  %2512 = vmatpush3.bf16.msra.mxu1 %v2509_v1 }
 0x31c   :  { %v2513_v4 = vpack.c.bf16 %v2114_v2, %v542_v3 }
 0x31e   :  { %v2117_v5 = vpop.f32.mrb[20].mxu0  ;;  %2514 = vmatprep.subr.bf16.mxu1 %v2513_v4 }
 0x31f   :  { %v552_v6 = vpop.f32.mrb[21].mxu0  ;;  %2516 = vmatpush3.bf16.msra.mxu1 %v2513_v4 }
 0x320   :  { %v2517_v7 = vpack.c.bf16 %v2117_v5, %v552_v6 }
 0x322   :  { %v2120_v8 = vpop.f32.mrb[22].mxu0  ;;  %2518 = vmatprep.subr.bf16.mxu1 %v2517_v7 }
 0x323   :  { %v562_v9 = vpop.f32.mrb[23].mxu0  ;;  %2520 = vmatpush3.bf16.msra.mxu1 %v2517_v7 }
 0x324   :  { %v2521_v10 = vpack.c.bf16 %v2120_v8, %v562_v9 }
 0x326   :  { %v2123_v11 = vpop.f32.mrb[24].mxu0  ;;  %2522 = vmatprep.subr.bf16.mxu1 %v2521_v10 }
 0x327   :  { %v572_v12 = vpop.f32.mrb[25].mxu0  ;;  %2524 = vmatpush3.bf16.msra.mxu1 %v2521_v10 }
 0x328   :  { %v2525_v13 = vpack.c.bf16 %v2123_v11, %v572_v12 }
 0x32a   :  { %v2126_v14 = vpop.f32.mrb[26].mxu0  ;;  %2526 = vmatprep.subr.bf16.mxu1 %v2525_v13 }
 0x32b   :  { %v582_v15 = vpop.f32.mrb[27].mxu0  ;;  %2528 = vmatpush3.bf16.msra.mxu1 %v2525_v13 }
 0x32c   :  { %v2529_v16 = vpack.c.bf16 %v2126_v14, %v582_v15 }
 0x32e   :  { %v2129_v17 = vpop.f32.mrb[28].mxu0  ;;  %2530 = vmatprep.subr.bf16.mxu1 %v2529_v16 }
 0x32f   :  { %v592_v18 = vpop.f32.mrb[29].mxu0  ;;  %2532 = vmatpush3.bf16.msra.mxu1 %v2529_v16 }
 0x330   :  { %v2533_v19 = vpack.c.bf16 %v2129_v17, %v592_v18 }
 0x332   :  { %v2132_v20 = vpop.f32.mrb[30].mxu0  ;;  %2534 = vmatprep.subr.bf16.mxu1 %v2533_v19 }
 0x333   :  { %v602_v21 = vpop.f32.mrb[31].mxu0  ;;  %2536 = vmatpush3.bf16.msra.mxu1 %v2533_v19 }
 0x334   :  { %v2537_v37 = vpack.c.bf16 %v2132_v20, %v602_v21 }
 0x336   :  { %2538 = vmatprep.subr.bf16.mxu1 %v2537_v37 }
 0x337   :  { %2540 = vmatpush3.bf16.msra.mxu1 %v2537_v37 }
 0x33a   :  { %2166 = vmatmul.mubr.f32.vlgmr.msra.gmra.mrb[16].mxu1 %v2914_v22 }
 0x33b   :  { %2168 = vmatprep.mubr.f32.mxu1 %v2916_v23 }
 0x33e   :  { %2169 = vmatmul.mubr.f32.gmra.mrb[18].mxu1 %v2920_v24 }
 0x33f   :  { %2171 = vmatprep.mubr.f32.mxu1 %v2922_v25 }
 0x342   :  { %2172 = vmatmul.mubr.f32.gmra.mrb[20].mxu1 %v2926_v26 }
 0x343   :  { %2174 = vmatprep.mubr.f32.mxu1 %v2928_v27 }
 0x346   :  { %2175 = vmatmul.mubr.f32.gmra.mrb[22].mxu1 %v2932_v28 }
 0x347   :  { %2177 = vmatprep.mubr.f32.mxu1 %v2934_v29 }
 0x34a   :  { %2178 = vmatmul.mubr.f32.gmra.mrb[24].mxu1 %v2938_v30 }
 0x34b   :  { %2180 = vmatprep.mubr.f32.mxu1 %v2940_v31 }
 0x34e   :  { %2181 = vmatmul.mubr.f32.gmra.mrb[26].mxu1 %v2944_v32 }
 0x34f   :  { %2183 = vmatprep.mubr.f32.mxu1 %v2946_v33 }
 0x352   :  { %2184 = vmatmul.mubr.f32.gmra.mrb[28].mxu1 %v2950_v34 }
 0x353   :  { %2186 = vmatprep.mubr.f32.mxu1 %v2952_v35 }
 0x356   :  { %2187 = vmatmul.mubr.f32.gmra.mrb[30].mxu1 %v2956_v36 }
 0x357   :  { %2277 = vmatprep.mubr.f32.mxu1 %v2911_v40 }
 0x40d   :  { %v2167_v44 = vpop.f32.mrb[16].mxu1 }
 0x40e   :  { %v691_v45 = vadd.f32 %v2167_v44, %v1698_v43  ;;  %v685_v46 = vpop.f32.mrb[17].mxu1 }
 0x40f   :  { %v686_v47 = vadd.f32 %v1698_v43, %v685_v46  ;;  %v1113_v46 = vld [vmem:[#allocation12 + $0x188] sm:$0xff] }
 0x410   :  { %v765_v50 = vmax.f32 %v691_v45, 0.0  ;;  %v1112_v45 = vld [vmem:[#allocation12 + $0x180] sm:$0xff] }
 0x411   :  { %v764_v48 = vmax.f32 %v686_v47, 0.0  ;;  %v2170_v49 = vpop.f32.mrb[18].mxu1  ;;  %v1114_v47 = vld [vmem:[#allocation12 + $0x190] sm:$0xff] }
 0x412   :  { %v701_v51 = vadd.f32 %v2170_v49, %v1698_v43  ;;  %v695_v52 = vpop.f32.mrb[19].mxu1  ;;  %v1115_v49 = vld [vmem:[#allocation12 + $0x198] sm:$0xff] }
 0x413   :  { %v696_v41 = vadd.f32 %v1698_v43, %v695_v52  ;;  %2221 = vmatprep.mubr.f32.mxu0 %v764_v48  ;;  %v2605_v48 = vpack.c.bf16 %v1113_v46, %v1112_v45  ;;  %v1117_v52 = vld [vmem:[#allocation12 + $0x1a8] sm:$0xff]  ;;  %v1700_v45 = vld [vmem:[%s3291_s5 + $0x2] ss:$0 sm:$0xff] }
 0x414   :  { %2222 = vmatmul.mubr.f32.vlgmr.msra.gmra.mrb[32].mxu0 %v765_v50  ;;  %v767_v55 = vmax.f32 %v701_v51, 0.0  ;;  %v2609_v50 = vpack.c.bf16 %v1115_v49, %v1114_v47  ;;  %v1116_v51 = vld [vmem:[#allocation12 + $0x1a0] sm:$0xff] }
 0x415   :  { %v766_v53 = vmax.f32 %v696_v41, 0.0  ;;  %v2173_v54 = vpop.f32.mrb[20].mxu1  ;;  %2606 = vmatprep.subr.bf16.mxu0 %v2605_v48  ;;  %v2613_v41 = vpack.c.bf16 %v1117_v52, %v1116_v51 }
 0x416   :  { %v711_v56 = vadd.f32 %v2173_v54, %v1698_v43  ;;  %v705_v57 = vpop.f32.mrb[21].mxu1  ;;  %2608 = vmatpush3.bf16.msra.mxu0 %v2605_v48 }
 0x417   :  { %v706_v58 = vadd.f32 %v1698_v43, %v705_v57  ;;  %2224 = vmatprep.mubr.f32.mxu0 %v766_v53  ;;  %2610 = vmatprep.subr.bf16.mxu0 %v2609_v50  ;;  %v1118_v53 = vld [vmem:[#allocation12 + $0x1b0] sm:$0xff] }
 0x418   :  { %2225 = vmatmul.mubr.f32.gmra.mrb[34].mxu0 %v767_v55  ;;  %v769_v61 = vmax.f32 %v711_v56, 0.0  ;;  %v1120_v55 = vld [vmem:[#allocation12 + $0x1c0] sm:$0xff]  ;;  %v1121_v56 = vld [vmem:[#allocation12 + $0x1c8] sm:$0xff] }
 0x419   :  { %v768_v59 = vmax.f32 %v706_v58, 0.0  ;;  %v2176_v60 = vpop.f32.mrb[22].mxu1  ;;  %v2621_v57 = vpack.c.bf16 %v1121_v56, %v1120_v55  ;;  %v1122_v58 = vld [vmem:[#allocation12 + $0x1d0] sm:$0xff] }
 0x41a   :  { %v721_v62 = vadd.f32 %v2176_v60, %v1698_v43  ;;  %v715_v63 = vpop.f32.mrb[23].mxu1  ;;  %2612 = vmatpush3.bf16.msra.mxu0 %v2609_v50 }
 0x41b   :  { %v716_v0 = vadd.f32 %v1698_v43, %v715_v63  ;;  %2227 = vmatprep.mubr.f32.mxu0 %v768_v59  ;;  %2614 = vmatprep.subr.bf16.mxu0 %v2613_v41  ;;  %v1123_v59 = vld [vmem:[#allocation12 + $0x1d8] sm:$0xff] }
 0x41c   :  { %2228 = vmatmul.mubr.f32.gmra.mrb[36].mxu0 %v769_v61  ;;  %v771_v3 = vmax.f32 %v721_v62, 0.0  ;;  %v2625_v60 = vpack.c.bf16 %v1123_v59, %v1122_v58  ;;  %v1124_v61 = vld [vmem:[#allocation12 + $0x1e0] sm:$0xff]  ;;  %v1125_v62 = vld [vmem:[#allocation12 + $0x1e8] sm:$0xff] }
 0x41d   :  { %v770_v1 = vmax.f32 %v716_v0, 0.0  ;;  %v2179_v2 = vpop.f32.mrb[24].mxu1  ;;  %v2629_v63 = vpack.c.bf16 %v1125_v62, %v1124_v61 }
 0x41e   :  { %v731_v4 = vadd.f32 %v2179_v2, %v1698_v43  ;;  %v725_v5 = vpop.f32.mrb[25].mxu1  ;;  %2616 = vmatpush3.bf16.msra.mxu0 %v2613_v41 }
 0x41f   :  { %v726_v6 = vadd.f32 %v1698_v43, %v725_v5  ;;  %2230 = vmatprep.mubr.f32.mxu0 %v770_v1 }
 0x420   :  { %2231 = vmatmul.mubr.f32.gmra.mrb[38].mxu0 %v771_v3  ;;  %v773_v9 = vmax.f32 %v731_v4, 0.0 }
 0x421   :  { %v772_v7 = vmax.f32 %v726_v6, 0.0  ;;  %v2182_v8 = vpop.f32.mrb[26].mxu1 }
 0x422   :  { %v741_v10 = vadd.f32 %v2182_v8, %v1698_v43  ;;  %v735_v11 = vpop.f32.mrb[27].mxu1 }
 0x423   :  { %v736_v12 = vadd.f32 %v1698_v43, %v735_v11  ;;  %2233 = vmatprep.mubr.f32.mxu0 %v772_v7 }
 0x424   :  { %2234 = vmatmul.mubr.f32.gmra.mrb[40].mxu0 %v773_v9  ;;  %v775_v15 = vmax.f32 %v741_v10, 0.0 }
 0x425   :  { %v774_v13 = vmax.f32 %v736_v12, 0.0  ;;  %v2185_v14 = vpop.f32.mrb[28].mxu1 }
 0x426   :  { %v751_v16 = vadd.f32 %v2185_v14, %v1698_v43  ;;  %v745_v17 = vpop.f32.mrb[29].mxu1 }
 0x427   :  { %v746_v18 = vadd.f32 %v1698_v43, %v745_v17  ;;  %2236 = vmatprep.mubr.f32.mxu0 %v774_v13 }
 0x428   :  { %2237 = vmatmul.mubr.f32.gmra.mrb[42].mxu0 %v775_v15  ;;  %v777_v21 = vmax.f32 %v751_v16, 0.0 }
 0x429   :  { %v776_v19 = vmax.f32 %v746_v18, 0.0  ;;  %v2188_v20 = vpop.f32.mrb[30].mxu1 }
 0x42a   :  { %v761_v37 = vadd.f32 %v2188_v20, %v1698_v43  ;;  %v755_v38 = vpop.f32.mrb[31].mxu1 }
 0x42b   :  { %v756_v39 = vadd.f32 %v1698_v43, %v755_v38  ;;  %2239 = vmatprep.mubr.f32.mxu0 %v776_v19  ;;  %v1119_v43 = vld [vmem:[#allocation12 + $0x1b8] sm:$0xff] }
 0x42c   :  { %2240 = vmatmul.mubr.f32.gmra.mrb[44].mxu0 %v777_v21  ;;  %v779_v44 = vmax.f32 %v761_v37, 0.0  ;;  %v2617_v54 = vpack.c.bf16 %v1119_v43, %v1118_v53 }
 0x42d   :  { %v778_v42 = vmax.f32 %v756_v39, 0.0  ;;  %v1126_v39 = vld [vmem:[#allocation12 + $0x1f0] sm:$0xff] }
 0x42e   :  { %2618 = vmatprep.subr.bf16.mxu0 %v2617_v54 }
 0x42f   :  { %2242 = vmatprep.mubr.f32.mxu0 %v778_v42  ;;  %2620 = vmatpush3.bf16.msra.mxu0 %v2617_v54  ;;  %v1127_v42 = vld [vmem:[#allocation12 + $0x1f8] sm:$0xff] }
 0x430   :  { %2243 = vmatmul.mubr.f32.gmra.mrb[46].mxu0 %v779_v44  ;;  %2622 = vmatprep.subr.bf16.mxu0 %v2621_v57  ;;  %v2633_v44 = vpack.c.bf16 %v1127_v42, %v1126_v39 }
 0x433   :  { %2624 = vmatpush3.bf16.msra.mxu0 %v2621_v57 }
 0x434   :  { %2626 = vmatprep.subr.bf16.mxu0 %v2625_v60 }
 0x437   :  { %2628 = vmatpush3.bf16.msra.mxu0 %v2625_v60 }
 0x438   :  { %2630 = vmatprep.subr.bf16.mxu0 %v2629_v63 }
 0x43b   :  { %2632 = vmatpush3.bf16.msra.mxu0 %v2629_v63 }
 0x43c   :  { %2634 = vmatprep.subr.bf16.mxu0 %v2633_v44 }
 0x43f   :  { %2636 = vmatpush3.bf16.msra.mxu0 %v2633_v44 }
 0x4e7   :  { %v2223_v0 = vpop.f32.mrb[32].mxu0 }
 0x4e8   :  { %v863_v1 = vpop.f32.mrb[33].mxu0 }
 0x4e9   :  { %v2573_v2 = vpack.c.bf16 %v2223_v0, %v863_v1 }
 0x4eb   :  { %v2226_v3 = vpop.f32.mrb[34].mxu0  ;;  %2574 = vmatprep.subr.bf16.mxu1 %v2573_v2 }
 0x4ec   :  { %v873_v4 = vpop.f32.mrb[35].mxu0  ;;  %2576 = vmatpush3.bf16.msra.mxu1 %v2573_v2 }
 0x4ed   :  { %v2577_v5 = vpack.c.bf16 %v2226_v3, %v873_v4 }
 0x4ef   :  { %v2229_v6 = vpop.f32.mrb[36].mxu0  ;;  %2578 = vmatprep.subr.bf16.mxu1 %v2577_v5 }
 0x4f0   :  { %v883_v7 = vpop.f32.mrb[37].mxu0  ;;  %2580 = vmatpush3.bf16.msra.mxu1 %v2577_v5 }
 0x4f1   :  { %v2581_v8 = vpack.c.bf16 %v2229_v6, %v883_v7 }
 0x4f3   :  { %v2232_v9 = vpop.f32.mrb[38].mxu0  ;;  %2582 = vmatprep.subr.bf16.mxu1 %v2581_v8 }
 0x4f4   :  { %v893_v10 = vpop.f32.mrb[39].mxu0  ;;  %2584 = vmatpush3.bf16.msra.mxu1 %v2581_v8 }
 0x4f5   :  { %v2585_v11 = vpack.c.bf16 %v2232_v9, %v893_v10 }
 0x4f7   :  { %v2235_v12 = vpop.f32.mrb[40].mxu0  ;;  %2586 = vmatprep.subr.bf16.mxu1 %v2585_v11 }
 0x4f8   :  { %v903_v13 = vpop.f32.mrb[41].mxu0  ;;  %2588 = vmatpush3.bf16.msra.mxu1 %v2585_v11 }
 0x4f9   :  { %v2589_v14 = vpack.c.bf16 %v2235_v12, %v903_v13 }
 0x4fb   :  { %v2238_v15 = vpop.f32.mrb[42].mxu0  ;;  %2590 = vmatprep.subr.bf16.mxu1 %v2589_v14 }
 0x4fc   :  { %v913_v16 = vpop.f32.mrb[43].mxu0  ;;  %2592 = vmatpush3.bf16.msra.mxu1 %v2589_v14 }
 0x4fd   :  { %v2593_v17 = vpack.c.bf16 %v2238_v15, %v913_v16 }
 0x4ff   :  { %v2241_v18 = vpop.f32.mrb[44].mxu0  ;;  %2594 = vmatprep.subr.bf16.mxu1 %v2593_v17 }
 0x500   :  { %v923_v19 = vpop.f32.mrb[45].mxu0  ;;  %2596 = vmatpush3.bf16.msra.mxu1 %v2593_v17 }
 0x501   :  { %v2597_v20 = vpack.c.bf16 %v2241_v18, %v923_v19 }
 0x503   :  { %v2244_v21 = vpop.f32.mrb[46].mxu0  ;;  %2598 = vmatprep.subr.bf16.mxu1 %v2597_v20 }
 0x504   :  { %v933_v37 = vpop.f32.mrb[47].mxu0  ;;  %2600 = vmatpush3.bf16.msra.mxu1 %v2597_v20 }
 0x505   :  { %v2601_v38 = vpack.c.bf16 %v2244_v21, %v933_v37 }
 0x507   :  { %2602 = vmatprep.subr.bf16.mxu1 %v2601_v38 }
 0x508   :  { %2604 = vmatpush3.bf16.msra.mxu1 %v2601_v38 }
 0x50b   :  { %2278 = vmatmul.mubr.f32.vlgmr.msra.gmra.mrb[32].mxu1 %v2914_v22 }
 0x50c   :  { %2280 = vmatprep.mubr.f32.mxu1 %v2916_v23 }
 0x50f   :  { %2281 = vmatmul.mubr.f32.gmra.mrb[34].mxu1 %v2920_v24 }
 0x510   :  { %2283 = vmatprep.mubr.f32.mxu1 %v2922_v25 }
 0x513   :  { %2284 = vmatmul.mubr.f32.gmra.mrb[36].mxu1 %v2926_v26 }
 0x514   :  { %2286 = vmatprep.mubr.f32.mxu1 %v2928_v27 }
 0x517   :  { %2287 = vmatmul.mubr.f32.gmra.mrb[38].mxu1 %v2932_v28 }
 0x518   :  { %2289 = vmatprep.mubr.f32.mxu1 %v2934_v29 }
 0x51b   :  { %2290 = vmatmul.mubr.f32.gmra.mrb[40].mxu1 %v2938_v30 }
 0x51c   :  { %2292 = vmatprep.mubr.f32.mxu1 %v2940_v31 }
 0x51f   :  { %2293 = vmatmul.mubr.f32.gmra.mrb[42].mxu1 %v2944_v32 }
 0x520   :  { %2295 = vmatprep.mubr.f32.mxu1 %v2946_v33 }
 0x523   :  { %2296 = vmatmul.mubr.f32.gmra.mrb[44].mxu1 %v2950_v34 }
 0x524   :  { %2298 = vmatprep.mubr.f32.mxu1 %v2952_v35 }
 0x527   :  { %2299 = vmatmul.mubr.f32.gmra.mrb[46].mxu1 %v2956_v36 }
 0x528   :  { %2389 = vmatprep.mubr.f32.mxu1 %v2911_v40 }
 0x5de   :  { %v2279_v46 = vpop.f32.mrb[32].mxu1 }
 0x5df   :  { %v1022_v47 = vadd.f32 %v2279_v46, %v1700_v45  ;;  %v1016_v48 = vpop.f32.mrb[33].mxu1 }
 0x5e0   :  { %v1017_v49 = vadd.f32 %v1700_v45, %v1016_v48 }
 0x5e1   :  { %v1096_v52 = vmax.f32 %v1022_v47, 0.0 }
 0x5e2   :  { %v1095_v50 = vmax.f32 %v1017_v49, 0.0  ;;  %v2282_v51 = vpop.f32.mrb[34].mxu1 }
 0x5e3   :  { %v1032_v41 = vadd.f32 %v2282_v51, %v1700_v45  ;;  %v1026_v53 = vpop.f32.mrb[35].mxu1 }
 0x5e4   :  { %v1027_v43 = vadd.f32 %v1700_v45, %v1026_v53  ;;  %2333 = vmatprep.mubr.f32.mxu0 %v1095_v50 }
 0x5e5   :  { %2334 = vmatmul.mubr.f32.vlgmr.msra.gmra.mrb[48].mxu0 %v1096_v52  ;;  %v1098_v55 = vmax.f32 %v1032_v41, 0.0 }
 0x5e6   :  { %v1097_v40 = vmax.f32 %v1027_v43, 0.0  ;;  %v2285_v54 = vpop.f32.mrb[36].mxu1 }
 0x5e7   :  { %v1042_v56 = vadd.f32 %v2285_v54, %v1700_v45  ;;  %v1036_v57 = vpop.f32.mrb[37].mxu1 }
 0x5e8   :  { %v1037_v58 = vadd.f32 %v1700_v45, %v1036_v57  ;;  %2336 = vmatprep.mubr.f32.mxu0 %v1097_v40 }
 0x5e9   :  { %2337 = vmatmul.mubr.f32.gmra.mrb[50].mxu0 %v1098_v55  ;;  %v1100_v61 = vmax.f32 %v1042_v56, 0.0 }
 0x5ea   :  { %v1099_v59 = vmax.f32 %v1037_v58, 0.0  ;;  %v2288_v60 = vpop.f32.mrb[38].mxu1 }
 0x5eb   :  { %v1052_v62 = vadd.f32 %v2288_v60, %v1700_v45  ;;  %v1046_v63 = vpop.f32.mrb[39].mxu1 }
 0x5ec   :  { %v1047_v0 = vadd.f32 %v1700_v45, %v1046_v63  ;;  %2339 = vmatprep.mubr.f32.mxu0 %v1099_v59 }
 0x5ed   :  { %2340 = vmatmul.mubr.f32.gmra.mrb[52].mxu0 %v1100_v61  ;;  %v1102_v3 = vmax.f32 %v1052_v62, 0.0 }
 0x5ee   :  { %v1101_v1 = vmax.f32 %v1047_v0, 0.0  ;;  %v2291_v2 = vpop.f32.mrb[40].mxu1 }
 0x5ef   :  { %v1062_v4 = vadd.f32 %v2291_v2, %v1700_v45  ;;  %v1056_v5 = vpop.f32.mrb[41].mxu1 }
 0x5f0   :  { %v1057_v6 = vadd.f32 %v1700_v45, %v1056_v5  ;;  %2342 = vmatprep.mubr.f32.mxu0 %v1101_v1  ;;  %v1456_v5 = vstv %s3041_s7 }
 0x5f1   :  { %2343 = vmatmul.mubr.f32.gmra.mrb[54].mxu0 %v1102_v3  ;;  %v1104_v9 = vmax.f32 %v1062_v4, 0.0 }
 0x5f2   :  { %v1103_v7 = vmax.f32 %v1057_v6, 0.0  ;;  %v2294_v8 = vpop.f32.mrb[42].mxu1 }
 0x5f3   :  { %v1072_v10 = vadd.f32 %v2294_v8, %v1700_v45  ;;  %v1066_v11 = vpop.f32.mrb[43].mxu1 }
 0x5f4   :  { %v1067_v12 = vadd.f32 %v1700_v45, %v1066_v11  ;;  %2345 = vmatprep.mubr.f32.mxu0 %v1103_v7 }
 0x5f5   :  { %2346 = vmatmul.mubr.f32.gmra.mrb[56].mxu0 %v1104_v9  ;;  %v1106_v15 = vmax.f32 %v1072_v10, 0.0 }
 0x5f6   :  { %v1105_v13 = vmax.f32 %v1067_v12, 0.0  ;;  %v2297_v14 = vpop.f32.mrb[44].mxu1 }
 0x5f7   :  { %v1082_v16 = vadd.f32 %v2297_v14, %v1700_v45  ;;  %v1076_v17 = vpop.f32.mrb[45].mxu1  ;;  %v3079_v14 = vstv %s3016_s26 }
 0x5f8   :  { %v1077_v18 = vadd.f32 %v1700_v45, %v1076_v17  ;;  %2348 = vmatprep.mubr.f32.mxu0 %v1105_v13 }
 0x5f9   :  { %2349 = vmatmul.mubr.f32.gmra.mrb[58].mxu0 %v1106_v15  ;;  %v1108_v21 = vmax.f32 %v1082_v16, 0.0  ;;  %v1506_v15 = vstv %s3057_s9 }
 0x5fa   :  { %v1107_v19 = vmax.f32 %v1077_v18, 0.0  ;;  %v2300_v20 = vpop.f32.mrb[46].mxu1 }
 0x5fb   :  { %v1092_v37 = vadd.f32 %v2300_v20, %v1700_v45  ;;  %v1086_v38 = vpop.f32.mrb[47].mxu1  ;;  %v1467_v20 = vstv %s1466_s12 }
 0x5fc   :  { %v1087_v39 = vadd.f32 %v1700_v45, %v1086_v38  ;;  %2351 = vmatprep.mubr.f32.mxu0 %v1107_v19 }
 0x5fd   :  { %2352 = vmatmul.mubr.f32.gmra.mrb[60].mxu0 %v1108_v21  ;;  %v1110_v44 = vmax.f32 %v1092_v37, 0.0 }
 0x5fe   :  { %v1109_v42 = vmax.f32 %v1087_v39, 0.0 }
 0x600   :  { %2354 = vmatprep.mubr.f32.mxu0 %v1109_v42  ;;  %v1511_v42 = vstv %s3023_s29 }
 0x601   :  { %2355 = vmatmul.mubr.f32.gmra.mrb[62].mxu0 %v1110_v44 }
 0x6b8   :  { %v2335_v46 = vpop.f32.mrb[48].mxu0 }
 0x6b9   :  { %v1194_v47 = vpop.f32.mrb[49].mxu0 }
 0x6ba   :  { %v2637_v48 = vpack.c.bf16 %v2335_v46, %v1194_v47 }
 0x6bc   :  { %v2338_v49 = vpop.f32.mrb[50].mxu0  ;;  %2638 = vmatprep.subr.bf16.mxu1 %v2637_v48 }
 0x6bd   :  { %v1204_v50 = vpop.f32.mrb[51].mxu0  ;;  %2640 = vmatpush3.bf16.msra.mxu1 %v2637_v48 }
 0x6be   :  { %v2641_v51 = vpack.c.bf16 %v2338_v49, %v1204_v50  ;;  %v1517_v50 = vstv %s1516_s14 }
 0x6c0   :  { %v2341_v52 = vpop.f32.mrb[52].mxu0  ;;  %2642 = vmatprep.subr.bf16.mxu1 %v2641_v51 }
 0x6c1   :  { %v1214_v41 = vpop.f32.mrb[53].mxu0  ;;  %2644 = vmatpush3.bf16.msra.mxu1 %v2641_v51 }
 0x6c2   :  { %v2645_v53 = vpack.c.bf16 %v2341_v52, %v1214_v41 }
 0x6c4   :  { %v2344_v45 = vpop.f32.mrb[54].mxu0  ;;  %2646 = vmatprep.subr.bf16.mxu1 %v2645_v53 }
 0x6c5   :  { %v1224_v43 = vpop.f32.mrb[55].mxu0  ;;  %2648 = vmatpush3.bf16.msra.mxu1 %v2645_v53 }
 0x6c6   :  { %v2649_v40 = vpack.c.bf16 %v2344_v45, %v1224_v43 }
 0x6c8   :  { %v2347_v54 = vpop.f32.mrb[56].mxu0  ;;  %2650 = vmatprep.subr.bf16.mxu1 %v2649_v40 }
 0x6c9   :  { %v1234_v55 = vpop.f32.mrb[57].mxu0  ;;  %2652 = vmatpush3.bf16.msra.mxu1 %v2649_v40  ;;  %v1606_v40 = vstv %s3115_s15 }
 0x6ca   :  { %v2653_v56 = vpack.c.bf16 %v2347_v54, %v1234_v55 }
 0x6cc   :  { %v2350_v57 = vpop.f32.mrb[58].mxu0  ;;  %2654 = vmatprep.subr.bf16.mxu1 %v2653_v56 }
 0x6cd   :  { %v1244_v58 = vpop.f32.mrb[59].mxu0  ;;  %2656 = vmatpush3.bf16.msra.mxu1 %v2653_v56 }
 0x6ce   :  { %v2657_v59 = vpack.c.bf16 %v2350_v57, %v1244_v58  ;;  %v1611_v58 = vstv %s3032_s30 }
 0x6d0   :  { %v2353_v60 = vpop.f32.mrb[60].mxu0  ;;  %2658 = vmatprep.subr.bf16.mxu1 %v2657_v59 }
 0x6d1   :  { %v1254_v61 = vpop.f32.mrb[61].mxu0  ;;  %2660 = vmatpush3.bf16.msra.mxu1 %v2657_v59 }
 0x6d2   :  { %v2661_v62 = vpack.c.bf16 %v2353_v60, %v1254_v61  ;;  %v1617_v61 = vstv %s1616_s17 }
 0x6d4   :  { %v2356_v63 = vpop.f32.mrb[62].mxu0  ;;  %2662 = vmatprep.subr.bf16.mxu1 %v2661_v62 }
 0x6d5   :  { %v1264_v0 = vpop.f32.mrb[63].mxu0  ;;  %2664 = vmatpush3.bf16.msra.mxu1 %v2661_v62 }
 0x6d6   :  { %v2665_v1 = vpack.c.bf16 %v2356_v63, %v1264_v0  ;;  %v3293_v0 = vmov 0 }
 0x6d8   :  { %2666 = vmatprep.subr.bf16.mxu1 %v2665_v1 }
 0x6d9   :  { %2668 = vmatpush3.bf16.msra.mxu1 %v2665_v1  ;;  %v3295_v1 = vmov 0 }
 0x6dc   :  { %2390 = vmatmul.mubr.f32.vlgmr.msra.gmra.mrb[48].mxu1 %v2914_v22  ;;  %v3021_v22 = vld [vmem:[%s3291_s5 + $0x3] ss:$0 sm:$0xff]  ;;  %s3029_s5 = sld [smem:[#allocation3 + $0x2]] }
 0x6dd   :  { %2392 = vmatprep.mubr.f32.mxu1 %v2916_v23 }
 0x6e0   :  { %2393 = vmatmul.mubr.f32.gmra.mrb[50].mxu1 %v2920_v24 }
 0x6e1   :  { %2395 = vmatprep.mubr.f32.mxu1 %v2922_v25 }
 0x6e2   :  { %p1549_p6 = scmp.lt.s32.totalorder %s3029_s5, 96  ;;  %v1561_v51 = vstv %s3029_s5  ;;  %s1566_s16 = sadd.s32 %s3071_s11, %s3029_s5 }
 0x6e3   :  { %v1567_v56 = vstv %s1566_s16 }
 0x6e4   :  { %2396 = vmatmul.mubr.f32.gmra.mrb[52].mxu1 %v2926_v26  ;;  %s3092_s13 = scalar_select %p1549_p6, %s3029_s5, 96 }
 0x6e5   :  { %2398 = vmatprep.mubr.f32.mxu1 %v2928_v27  ;;  %v1451_v27 = vlaneseq }
 0x6e6   :  { %v1556_v48 = vstv %s3092_s13  ;;  %s1551_s20 = scalar_lea.vmem [#allocation2], %s3092_s13 }
 0x6e8   :  { %2399 = vmatmul.mubr.f32.gmra.mrb[54].mxu1 %v2932_v28 }
 0x6e9   :  { %2401 = vmatprep.mubr.f32.mxu1 %v2934_v29 }
 0x6ec   :  { %2402 = vmatmul.mubr.f32.gmra.mrb[56].mxu1 %v2938_v30 }
 0x6ed   :  { %2404 = vmatprep.mubr.f32.mxu1 %v2940_v31 }
 0x6f0   :  { %2405 = vmatmul.mubr.f32.gmra.mrb[58].mxu1 %v2944_v32  ;;  %v3037_v32 = vshrl.u32 %v1451_v27, 7 }
 0x6f1   :  { %2407 = vmatprep.mubr.f32.mxu1 %v2946_v33 }
 0x6f2   :  { %v3046_v2 = vadd.s32 8, %v3037_v32  ;;  %v3051_v4 = vadd.s32 16, %v3037_v32  ;;  %v3061_v8 = vadd.s32 24, %v3037_v32  ;;  %v3066_v10 = vadd.s32 %v1456_v5, %v3037_v32 }
 0x6f3   :  { %v1507_v21 = vadd.s32 %v1506_v15, %v3037_v32  ;;  %v1557_v41 = vadd.s32 %v1556_v48, %v3037_v32  ;;  %v1607_v60 = vadd.s32 %v1606_v40, %v3037_v32 }
 0x6f4   :  { %2408 = vmatmul.mubr.f32.gmra.mrb[60].mxu1 %v2950_v34  ;;  %v3069_v11 = vadd.s32 %v1456_v5, %v3046_v2  ;;  %v3076_v13 = vadd.s32 %v1456_v5, %v3051_v4  ;;  %v3087_v18 = vadd.s32 %v1456_v5, %v3061_v8  ;;  %vm1462_vm0 = vcmp.ge.s32.totalorder %v3066_v10, %v3079_v14 }
 0x6f5   :  { %2410 = vmatprep.mubr.f32.mxu1 %v2952_v35  ;;  %v1508_v38 = vadd.s32 %v1506_v15, %v3046_v2  ;;  %v1509_v39 = vadd.s32 %v1506_v15, %v3051_v4  ;;  %v1510_v47 = vadd.s32 %v1506_v15, %v3061_v8  ;;  %vm1468_vm4 = vcmp.lt.s32.totalorder %v3066_v10, %v1467_v20 }
 0x6f6   :  { %vm1463_vm1 = vcmp.ge.s32.totalorder %v3069_v11, %v3079_v14  ;;  %vm1464_vm2 = vcmp.ge.s32.totalorder %v3076_v13, %v3079_v14  ;;  %vm1465_vm3 = vcmp.ge.s32.totalorder %v3087_v18, %v3079_v14  ;;  %vm1469_vm5 = vcmp.lt.s32.totalorder %v3069_v11, %v1467_v20  ;;  %vm3142_vm11 = vmand %vm1462_vm0, %vm1468_vm4 }
 0x6f7   :  { %vm1470_vm6 = vcmp.lt.s32.totalorder %v3076_v13, %v1467_v20  ;;  %vm1471_vm7 = vcmp.lt.s32.totalorder %v3087_v18, %v1467_v20  ;;  %vm1512_vm8 = vcmp.ge.s32.totalorder %v1507_v21, %v1511_v42  ;;  %v1558_v53 = vadd.s32 %v1556_v48, %v3046_v2  ;;  %vm3151_vm9 = vmand %vm1463_vm1, %vm1469_vm5 }
 0x6f8   :  { %2411 = vmatmul.mubr.f32.gmra.mrb[62].mxu1 %v2956_v36  ;;  %vm1518_vm12 = vcmp.lt.s32.totalorder %v1507_v21, %v1517_v50  ;;  %vm1519_vm13 = vcmp.lt.s32.totalorder %v1508_v38, %v1517_v50  ;;  %v1559_v55 = vadd.s32 %v1556_v48, %v3051_v4  ;;  %vm1520_vm14 = vcmp.lt.s32.totalorder %v1509_v39, %v1517_v50  ;;  %vm3160_vm10 = vmand %vm1464_vm2, %vm1470_vm6 }
 0x6f9   :  { %vm1521_vm15 = vcmp.lt.s32.totalorder %v1510_v47, %v1517_v50  ;;  %v1560_v57 = vadd.s32 %v1556_v48, %v3061_v8  ;;  %v3294_v0 = vsel %vm3142_vm11, 4294967295, %v3293_v0  ;;  %v3296_v1 = vsel %vm3151_vm9, 4294967295, %v3295_v1  ;;  %vm3171_vm1 = vmand %vm1465_vm3, %vm1471_vm7 }
 0x6fa   :  { %vm3177_vm2 = vmand %vm1512_vm8, %vm1518_vm12  ;;  %vm3303_vm5 = vcmp.ge.s32.totalorder %v1508_v38, %v1511_v42  ;;  %vm1564_vm4 = vcmp.ge.s32.totalorder %v1559_v55, %v1561_v51  ;;  %vm1570_vm0 = vcmp.lt.s32.totalorder %v1559_v55, %v1567_v56  ;;  %vm3306_vm3 = vcmp.ge.s32.totalorder %v1509_v39, %v1511_v42 }
 0x6fb   :  { %vm3183_vm6 = vmand %vm3303_vm5, %vm1519_vm13  ;;  %vm3309_vm8 = vcmp.ge.s32.totalorder %v1510_v47, %v1511_v42  ;;  %vm1565_vm13 = vcmp.ge.s32.totalorder %v1560_v57, %v1561_v51  ;;  %vm1571_vm5 = vcmp.lt.s32.totalorder %v1560_v57, %v1567_v56  ;;  %v1610_v32 = vadd.s32 %v1606_v40, %v3061_v8 }
 0x6fc   :  { %vm3190_vm7 = vmand %vm3306_vm3, %vm1520_vm14  ;;  %vm3316_vm14 = vcmp.lt.s32.totalorder %v1558_v53, %v1567_v56  ;;  %vm3317_vm3 = vcmp.ge.s32.totalorder %v1558_v53, %v1561_v51 }
 0x6fd   :  { %vm3196_vm12 = vmand %vm3309_vm8, %vm1521_vm15  ;;  %vm1612_vm15 = vcmp.ge.s32.totalorder %v1607_v60, %v1611_v58  ;;  %vm1618_vm8 = vcmp.lt.s32.totalorder %v1607_v60, %v1617_v61 }
 0x6fe   :  { %vm3217_vm11 = vmand %vm1565_vm13, %vm1571_vm5  ;;  %vm3332_vm13 = vnez %v3294_v0 }
 0x7af   :  { %v2391_v23 = vpop.f32.mrb[48].mxu1 }
 0x7b0   :  { %v1353_v24 = vadd.f32 %v2391_v23, %v3021_v22  ;;  %v1347_v25 = vpop.f32.mrb[49].mxu1  ;;  %v3297_v23 = vmov 0 }
 0x7b1   :  { %v1348_v26 = vadd.f32 %v3021_v22, %v1347_v25  ;;  %v3298_v23 = vsel %vm3160_vm10, 4294967295, %v3297_v23 }
 0x7b2   :  { %1427 = vst [vmem:[#allocation2 + $0x8] sm:$0xff] %v1353_v24  ;;  %v1608_v24 = vadd.s32 %v1606_v40, %v3046_v2 }
 0x7b3   :  { %1426 = vst [vmem:[#allocation2] sm:$0xff] %v1348_v26  ;;  %v2394_v28 = vpop.f32.mrb[50].mxu1  ;;  %v3299_v26 = vmov 0 }
 0x7b4   :  { %v1363_v29 = vadd.f32 %v2394_v28, %v3021_v22  ;;  %v1357_v30 = vpop.f32.mrb[51].mxu1  ;;  %v3300_v26 = vsel %vm3171_vm1, 4294967295, %v3299_v26  ;;  %v3301_v28 = vmov 0  ;;  %vm1613_vm10 = vcmp.ge.s32.totalorder %v1608_v24, %v1611_v58 }
 0x7b5   :  { %v1358_v31 = vadd.f32 %v3021_v22, %v1357_v30  ;;  %v3302_v28 = vsel %vm3177_vm2, 4294967295, %v3301_v28  ;;  %v3307_v30 = vmov 0  ;;  %vm3313_vm2 = vcmp.ge.s32.totalorder %v1557_v41, %v1561_v51 }
 0x7b6   :  { %1429 = vst [vmem:[#allocation2 + $0x18] sm:$0xff] %v1363_v29  ;;  %v3304_v29 = vmov 0  ;;  %v3308_v30 = vsel %vm3190_vm7, 4294967295, %v3307_v30  ;;  %vm3209_vm7 = vmand %vm3317_vm3, %vm3316_vm14  ;;  %vm1619_vm9 = vcmp.lt.s32.totalorder %v1608_v24, %v1617_v61  ;;  %vm1621_vm14 = vcmp.lt.s32.totalorder %v1610_v32, %v1617_v61 }
 0x7b7   :  { %1428 = vst [vmem:[#allocation2 + $0x10] sm:$0xff] %v1358_v31  ;;  %v2397_v33 = vpop.f32.mrb[52].mxu1  ;;  %v3305_v29 = vsel %vm3183_vm6, 4294967295, %v3304_v29  ;;  %v3310_v31 = vmov 0  ;;  %vm3312_vm6 = vcmp.lt.s32.totalorder %v1557_v41, %v1567_v56  ;;  %vm3221_vm3 = vmand %vm1612_vm15, %vm1618_vm8  ;;  %vm3336_vm5 = vnez %v3302_v28 }
 0x7b8   :  { %v1373_v34 = vadd.f32 %v2397_v33, %v3021_v22  ;;  %v1367_v35 = vpop.f32.mrb[53].mxu1  ;;  %v3311_v31 = vsel %vm3196_vm12, 4294967295, %v3310_v31  ;;  %vm3203_vm1 = vmand %vm3313_vm2, %vm3312_vm6  ;;  %v3314_v33 = vmov 0  ;;  %vm3337_vm15 = vnez %v3305_v29 }
 0x7b9   :  { %v1368_v36 = vadd.f32 %v3021_v22, %v1367_v35  ;;  %v3315_v33 = vsel %vm3203_vm1, 4294967295, %v3314_v33  ;;  %vm3213_vm12 = vmand %vm1564_vm4, %vm1570_vm0  ;;  %vm1615_vm1 = vcmp.ge.s32.totalorder %v1610_v32, %v1611_v58  ;;  %vm3338_vm8 = vnez %v3308_v30 }
 0x7ba   :  { %1431 = vst [vmem:[#allocation2 + $0x28] sm:$0xff] %v1373_v34  ;;  %v3318_v34 = vmov 0  ;;  %vm3233_vm4 = vmand %vm1615_vm1, %vm1621_vm14  ;;  %vm3335_vm1 = vnez %v3300_v26 }
 0x7bb   :  { %1430 = vst [vmem:[#allocation2 + $0x20] sm:$0xff] %v1368_v36  ;;  %v2400_v3 = vpop.f32.mrb[54].mxu1  ;;  %v3319_v34 = vsel %vm3209_vm7, 4294967295, %v3318_v34  ;;  %vm3225_vm7 = vmand %vm1613_vm10, %vm1619_vm9  ;;  %vm3333_vm9 = vnez %v3296_v1  ;;  %vm3334_vm10 = vnez %v3298_v23 }
 0x7bc   :  { %v1383_v6 = vadd.f32 %v2400_v3, %v3021_v22  ;;  %v1377_v7 = vpop.f32.mrb[55].mxu1  ;;  %vm3341_vm14 = vnez %v3319_v34 }
 0x7bd   :  { %v1378_v9 = vadd.f32 %v3021_v22, %v1377_v7 }
 0x7be   :  { %1433 = vst [vmem:[#allocation2 + $0x38] sm:$0xff] %v1383_v6 }
 0x7bf   :  { %1432 = vst [vmem:[#allocation2 + $0x30] sm:$0xff] %v1378_v9  ;;  %v2403_v12 = vpop.f32.mrb[56].mxu1 }
 0x7c0   :  { %v1393_v16 = vadd.f32 %v2403_v12, %v3021_v22  ;;  %v1387_v17 = vpop.f32.mrb[57].mxu1 }
 0x7c1   :  { %v1388_v19 = vadd.f32 %v3021_v22, %v1387_v17 }
 0x7c2   :  { %1435 = vst [vmem:[#allocation2 + $0x48] sm:$0xff] %v1393_v16 }
 0x7c3   :  { %1434 = vst [vmem:[#allocation2 + $0x40] sm:$0xff] %v1388_v19  ;;  %v2406_v37 = vpop.f32.mrb[58].mxu1 }
 0x7c4   :  { %v1403_v44 = vadd.f32 %v2406_v37, %v3021_v22  ;;  %v1397_v46 = vpop.f32.mrb[59].mxu1 }
 0x7c5   :  { %v1398_v49 = vadd.f32 %v3021_v22, %v1397_v46 }
 0x7c6   :  { %1437 = vst [vmem:[#allocation2 + $0x58] sm:$0xff] %v1403_v44 }
 0x7c7   :  { %1436 = vst [vmem:[#allocation2 + $0x50] sm:$0xff] %v1398_v49  ;;  %v2409_v52 = vpop.f32.mrb[60].mxu1 }
 0x7c8   :  { %v1413_v45 = vadd.f32 %v2409_v52, %v3021_v22  ;;  %v1407_v43 = vpop.f32.mrb[61].mxu1 }
 0x7c9   :  { %v1408_v54 = vadd.f32 %v3021_v22, %v1407_v43 }
 0x7ca   :  { %1439 = vst [vmem:[#allocation2 + $0x68] sm:$0xff] %v1413_v45 }
 0x7cb   :  { %1438 = vst [vmem:[#allocation2 + $0x60] sm:$0xff] %v1408_v54  ;;  %v2412_v59 = vpop.f32.mrb[62].mxu1 }
 0x7cc   :  { %v1423_v62 = vadd.f32 %v2412_v59, %v3021_v22  ;;  %v1417_v63 = vpop.f32.mrb[63].mxu1 }
 0x7cd   :  { %v1418_v25 = vadd.f32 %v3021_v22, %v1417_v63  ;;  %v1609_v22 = vadd.s32 %v1606_v40, %v3051_v4 }
 0x7ce   :  { %1441 = vst [vmem:[#allocation2 + $0x78] sm:$0xff] %v1423_v62 }
 0x7cf   :  { %1440 = vst [vmem:[#allocation2 + $0x70] sm:$0xff] %v1418_v25  ;;  %vm1614_vm2 = vcmp.ge.s32.totalorder %v1609_v22, %v1611_v58  ;;  %vm1620_vm6 = vcmp.lt.s32.totalorder %v1609_v22, %v1617_v61 }
 0x7d0   :  { %vm3229_vm0 = vmand %vm1614_vm2, %vm1620_vm6  ;;  %vm3339_vm2 = vnez %v3311_v31  ;;  %vm3340_vm6 = vnez %v3315_v33 }
 0x7d6   :  { %v1447_v6 = vld [vmem:[%s1446_s18] sm:$0xff]  ;;  %v1448_v7 = vld [vmem:[%s1446_s18 + $0x8] sm:$0xff]  ;;  %v1449_v8 = vld [vmem:[%s1446_s18 + $0x10] sm:$0xff] }
 0x7d7   :  { %v1450_v9 = vld [vmem:[%s1446_s18 + $0x18] sm:$0xff]  ;;  %v1484_v10 = vsel %vm3332_vm13, %v1447_v6, -inf  ;;  %v1485_v11 = vsel %vm3333_vm9, %v1448_v7, -inf  ;;  %v1486_v12 = vsel %vm3334_vm10, %v1449_v8, -inf  ;;  %v1502_v13 = vld [vmem:[%s1501_s19] sm:$0xff]  ;;  %v1503_v14 = vld [vmem:[%s1501_s19 + $0x8] sm:$0xff] }
 0x7d8   :  { %v1487_v15 = vsel %vm3335_vm1, %v1450_v9, -inf  ;;  %v1488_v16 = vmax.f32 %v1484_v10, %v1485_v11  ;;  %v1504_v17 = vld [vmem:[%s1501_s19 + $0x10] sm:$0xff]  ;;  %v1505_v18 = vld [vmem:[%s1501_s19 + $0x18] sm:$0xff]  ;;  %v1534_v19 = vsel %vm3336_vm5, %v1502_v13, -inf  ;;  %v1535_v20 = vsel %vm3337_vm15, %v1503_v14, -inf  ;;  %v1552_v21 = vld [vmem:[%s1551_s20] sm:$0xff] }
 0x7d9   :  { %v1489_v37 = vmax.f32 %v1486_v12, %v1487_v15  ;;  %v1536_v38 = vsel %vm3338_vm8, %v1504_v17, -inf  ;;  %v1537_v39 = vsel %vm3339_vm2, %v1505_v18, -inf  ;;  %v1538_v42 = vmax.f32 %v1534_v19, %v1535_v20  ;;  %v1553_v44 = vld [vmem:[%s1551_s20 + $0x8] sm:$0xff]  ;;  %v1554_v46 = vld [vmem:[%s1551_s20 + $0x10] sm:$0xff]  ;;  %v1555_v47 = vld [vmem:[%s1551_s20 + $0x18] sm:$0xff] }
 0x7da   :  { %v1539_v48 = vmax.f32 %v1536_v38, %v1537_v39  ;;  %v1584_v49 = vsel %vm3340_vm6, %v1552_v21, -inf  ;;  %v1585_v50 = vsel %vm3341_vm14, %v1553_v44, -inf  ;;  %v1586_v51 = vsel %vm3213_vm12, %v1554_v46, -inf  ;;  %v1602_v52 = vld [vmem:[%s1601_s21] sm:$0xff]  ;;  %v1603_v41 = vld [vmem:[%s1601_s21 + $0x8] sm:$0xff]  ;;  %v1604_v53 = vld [vmem:[%s1601_s21 + $0x10] sm:$0xff] }
 0x7db   :  { %v1490_v45 = vmax.f32 %v1488_v16, %v1489_v37  ;;  %v1587_v43 = vsel %vm3217_vm11, %v1555_v47, -inf  ;;  %v1588_v40 = vmax.f32 %v1584_v49, %v1585_v50  ;;  %v1605_v54 = vld [vmem:[%s1601_s21 + $0x18] sm:$0xff]  ;;  %v1634_v55 = vsel %vm3221_vm3, %v1602_v52, -inf }
 0x7dc   :  { %v1540_v56 = vmax.f32 %v1538_v42, %v1539_v48  ;;  %v1589_v57 = vmax.f32 %v1586_v51, %v1587_v43  ;;  %v1635_v58 = vsel %vm3225_vm7, %v1603_v41, -inf  ;;  %v1636_v59 = vsel %vm3229_vm0, %v1604_v53, -inf }
 0x7dd   :  { %v1491_v60 = vrot.slane %v1490_v45, 4  ;;  %v1637_v61 = vsel %vm3233_vm4, %v1605_v54, -inf  ;;  %v1638_v62 = vmax.f32 %v1634_v55, %v1635_v58  ;;  %vm1647_vm11 = vcmask 1040384  }
 0x7de   :  { %v1541_v63 = vrot.slane %v1540_v56, 4  ;;  %v1590_v0 = vmax.f32 %v1588_v40, %v1589_v57  ;;  %v1639_v1 = vmax.f32 %v1636_v59, %v1637_v61  ;;  %v1654_v8 = vand.u32 127, %v1451_v27 }
 0x7df   :  { %v1492_v23 = vmax.f32 %v1490_v45, %v1491_v60  ;;  %vm1649_vm7 = vcmask 1041408   ;;  %vm1651_vm12 = vcmask 1042432   ;;  %vm1659_vm0 = vcmask 1043456  }
 0x7e0   :  { %v1542_v24 = vmax.f32 %v1540_v56, %v1541_v63  ;;  %v1591_v25 = vrot.slane %v1590_v0, 4  ;;  %v1640_v26 = vmax.f32 %v1638_v62, %v1639_v1  ;;  %vm1655_vm3 = vcmp.lt.s32.totalorder %v1654_v8, 6 }
 0x7e1   :  { %v1493_v28 = vrot.slane %v1492_v23, 2 }
 0x7e2   :  { %v1543_v29 = vrot.slane %v1542_v24, 2  ;;  %v1592_v22 = vmax.f32 %v1590_v0, %v1591_v25  ;;  %v1641_v30 = vrot.slane %v1640_v26, 4 }
 0x7e3   :  { %v1494_v31 = vmax.f32 %v1492_v23, %v1493_v28 }
 0x7e4   :  { %v1544_v32 = vmax.f32 %v1542_v24, %v1543_v29  ;;  %v1593_v33 = vrot.slane %v1592_v22, 2  ;;  %v1642_v34 = vmax.f32 %v1640_v26, %v1641_v30 }
 0x7e5   :  { %v1495_v35 = vrot.slane %v1494_v31, 1 }
 0x7e6   :  { %v1545_v36 = vrot.slane %v1544_v32, 1  ;;  %v1594_v2 = vmax.f32 %v1592_v22, %v1593_v33  ;;  %v1643_v3 = vrot.slane %v1642_v34, 2 }
 0x7e7   :  { %v1496_v4 = vmax.f32 %v1494_v31, %v1495_v35 }
 0x7e8   :  { %v1546_v5 = vmax.f32 %v1544_v32, %v1545_v36  ;;  %v1595_v6 = vrot.slane %v1594_v2, 1  ;;  %v1644_v7 = vmax.f32 %v1642_v34, %v1643_v3 }
 0x7ea   :  { %v1596_v9 = vmax.f32 %v1594_v2, %v1595_v6  ;;  %v1645_v10 = vrot.slane %v1644_v7, 1  ;;  %v1648_v11 = vsel %vm1647_vm11, %v1496_v4, %v1546_v5 }
 0x7ec   :  { %v1646_v12 = vmax.f32 %v1644_v7, %v1645_v10  ;;  %v1650_v13 = vsel %vm1649_vm7, %v1648_v11, %v1596_v9 }
 0x7ee   :  { %v1652_v14 = vsel %vm1651_vm12, %v1650_v13, %v1646_v12 }
 0x7ef   :  { %v1658_v15 = vsel %vm1655_vm3, %v1652_v14, -inf }
 0x7f0   :  { %v1660_v16 = vsel %vm1659_vm0, %v1658_v15, -inf }
 0x7f1   :  { %1661 = vmax.xlane.f32.xlu0 %v1660_v16 }
 0x87e   :  { %v1662_v17 = vpop.xlane.xlu0 %1661 }
 0x87f   :  { %v1663_v18 = vsub.f32 %v1658_v15, %v1662_v17 }
 0x881   :  { %v1664_v19 = vmul.f32 1.442695, %v1663_v18 }
 0x883   :  { %2677 = vpow2.f32 %v1664_v19 }
 0x88d   :  { %v2678_v20 = vpop.eup %2677 }
 0x88e   :  { %v1666_v21 = vsel %vm1659_vm0, %v2678_v20, 0.0 }
 0x88f   :  { %1667 = vadd.xlane.f32.xlu0 %v1666_v21 }
 0x91c   :  { %v1668_v27 = vpop.xlane.xlu0 %1667 }
 0x91d   :  { %2679 = vlog2.f32 %v1668_v27 }
 0x927   :  { %v2680_v37 = vpop.eup %2679 }
 0x928   :  { %v1670_v38 = vmul.f32 0.6931472, %v2680_v37 }
 0x92a   :  { %v1671_v39 = vadd.f32 %v1670_v38, %v1662_v17 }
 0x92c   :  { %v1672_v42 = vsub.f32 %v1652_v14, %v1671_v39 }
 0x92e   :  { %1673 = vst [vmem:[#allocation13] sm:$0xf] %v1672_v42 }
 0x92f   :  { %2780 = shalt.err (!%p2777_p12)
}
 0x930   :  { %s2781_s3 = scalar_lea.hbm %s3292_s6, 64 }
 0x931   :  { %p2782_p13 = scmp.ne.s32.totalorder %s3292_s6, %s2781_s3  ;;  %p2785_p0 = scmp.lt.u32.totalorder %s2781_s3, %s3292_s6 }
 0x933   :  { %p2787_p1 = pnand %p2785_p0, %p2782_p13 }
 0x935   :  { %2790 = shalt.err (!%p2787_p1)
}
 0x936   :  { %1683 = dma.vmem_to_hbm [thread:$0]  %s1681_s23, 64, %s3292_s6, [#allocation5]  }
 0x937   :  { %2799 = dma.done.wait [#allocation5], 64  }
 0x938   :  { %2800 = vsyncadd [#allocation5], 4294967232 }
 0x939   :  { %1687 = vsyncpa [#allocation4], 1 }
 0x93a   :  { %1688 = vsyncpa [#allocation11], 1 }
 0x93b   :  { %1689 = vsyncpa [#allocation5], 1 }
 0x93c   :  { %1690 = vsyncpa [#allocation6], 1 }
 0x93d   :  { %1691 = vsyncpa [#allocation7], 1 }

</bundles_post_ra>
